<compile_context>
chip_gen: v7x
topology: tpu7x:2x2x1
jax: 0.10.0
libtpu: 0.0.40
codegen_flags: <defaults>
</compile_context>

<pallas_src>
import numpy as np
import jax
import jax.numpy as jnp
from jax.experimental import pallas as pl
from jax.experimental.pallas import tpu as pltpu

# ----------------------------- configuration --------------------------------
PATCH_SIZE = 8
SEQ_LEN    = 32
OVERLAP    = 0.5
STRIDE     = int(PATCH_SIZE * OVERLAP)                    # 4
N_PATCH    = int((SEQ_LEN - PATCH_SIZE) / STRIDE + 2)     # 8
FRAME_NUM  = N_PATCH - 1                                  # 7
D_MODEL    = PATCH_SIZE * 2                               # 16
D_QK       = 8
D_V        = 8
H_QK       = 2
H_V        = 2
D_FF       = 32
DIM_F      = D_FF // 2                                    # 16
N_LAYERS   = 2
N_CLASS    = 11
BATCH      = 2
LN_EPS     = 1e-5
SCALE      = float(D_QK) ** 0.5                           # torch.tensor(d_fix_qk)**0.5
OUT_LANES  = 128                                          # lane-dense classifier output
OUT_ROWS   = 8                                            # unmasked (8,128) output store

# bf16 weight-slab row layout (lane offset always 0; row offsets multiples of 16)
W_ROWS_EMB       = 2 * SEQ_LEN                            # 64  rows: folded frame+embedding
W_ROWS_PER_LAYER = 3 * D_MODEL                            # 48  rows: wf(16) | w1(16) | w2(16)
W_ROW_LAYER0     = W_ROWS_EMB
W_ROW_CLS        = W_ROWS_EMB + N_LAYERS * W_ROWS_PER_LAYER   # 160
W_SLAB_ROWS      = W_ROW_CLS + D_MODEL                        # 176

C_ROW_TOKADD     = 0
C_ROWS_PER_LAYER = 8                                      # ln1w,ln1b,b1,b2,ln2w,ln2b (+pad)


def _cslab_layout(bp):
    """f32 constant-slab row layout for a given token count bp = batch*N_PATCH."""
    row_mask   = 8
    row_clsb   = row_mask + ((bp + 7) // 8) * 8
    row_layer0 = row_clsb + 8
    total      = row_layer0 + N_LAYERS * C_ROWS_PER_LAYER
    return row_mask, row_clsb, row_layer0, total


# ------------------------- in-kernel math helpers ----------------------------
def _mm(a, b):
    # MXU matmul: bf16 inputs (weights are pre-cast bf16), f32 accumulation.
    return jnp.dot(a.astype(jnp.bfloat16), b.astype(jnp.bfloat16),
                   preferred_element_type=jnp.float32)


def _qkt(qh, kh):
    # q @ k.T via dot_general contracting the last dims of both operands.
    return jax.lax.dot_general(
        qh.astype(jnp.bfloat16), kh.astype(jnp.bfloat16),
        dimension_numbers=(((1,), (1,)), ((), ())),
        preferred_element_type=jnp.float32)


def _gelu_exact(x):
    # erf-based GELU (matches torch.nn.GELU()), Abramowitz & Stegun 7.1.26
    # polynomial (|err| <= 1.5e-7); the divide goes to the EUP (approx recip).
    a1, a2, a3, a4, a5 = 0.254829592, -0.284496736, 1.421413741, -1.453152027, 1.061405429
    p = 0.3275911
    z = x * 0.7071067811865476
    az = jnp.abs(z)
    t = pl.reciprocal(1.0 + p * az, approx=True)
    poly = ((((a5 * t + a4) * t + a3) * t + a2) * t + a1) * t
    erf = 1.0 - poly * jnp.exp(-az * az)
    erf = jnp.where(z < 0.0, -erf, erf)
    return 0.5 * x * (1.0 + erf)


def _layer_norm(y, w, b):
    # One-pass LN: var = E[y^2] - E[y]^2.
    mu = jnp.mean(y, axis=-1, keepdims=True)
    ms = jnp.mean(y * y, axis=-1, keepdims=True)
    var = ms - mu * mu
    return (y - mu) * jax.lax.rsqrt(var + LN_EPS) * w + b


# ------------------------------ fused Pallas kernel ---------------------------
def _transformer_layer(x, mask2, wf, w1, w2, ln1w, ln1b, b1, b2, ln2w, ln2b):
    """One Transformer_layer (MHSA bias=False, talking=False; DB_GLU_add FFN).

    x:     (BP, D_MODEL) flat token matrix (patch-major row order, BP = B*N_PATCH)
    mask2: (BP, 2*BP) additive batch-separation mask tiled for both heads
    wf:    (D_MODEL, 4*D_MODEL) bf16 = [wq/sqrt(dqk) | wk | wv0@wo0 | wv1@wo1]
    """
    n = x.shape[0]
    proj = _mm(x, wf)                                   # (n, 64)
    q   = proj[:, 0:H_QK * D_QK]                        # heads packed along lanes
    k   = proj[:, H_QK * D_QK:2 * H_QK * D_QK]
    vp0 = proj[:, 2 * H_QK * D_QK:2 * H_QK * D_QK + D_MODEL]
    vp1 = proj[:, 2 * H_QK * D_QK + D_MODEL:2 * H_QK * D_QK + 2 * D_MODEL]

    # Lane-packed two-head softmax: mask add / max / exp issued once over 2n lanes.
    l0 = _qkt(q[:, :D_QK], k[:, :D_QK])                 # (n, n)
    l1 = _qkt(q[:, D_QK:], k[:, D_QK:])                 # (n, n)
    logits = jnp.concatenate([l0, l1], axis=-1) + mask2  # (n, 2n)
    m = jnp.max(logits, axis=-1, keepdims=True)
    e = jnp.exp(logits - m)
    e0, e1 = e[:, :n], e[:, n:]
    r0 = pl.reciprocal(jnp.sum(e0, axis=-1, keepdims=True), approx=True)
    r1 = pl.reciprocal(jnp.sum(e1, axis=-1, keepdims=True), approx=True)
    # proj_v is pre-folded per head into vp0/vp1; normalize after the matmul.
    x_sa = _mm(e0, vp0) * r0 + _mm(e1, vp1) * r1

    h1 = _layer_norm(x + x_sa, ln1w, ln1b)

    # DB_GLU_block (merge_method='add', gelu, dropout=0): single GELU on full width.
    y = _mm(h1, w1) + b1                                # (n, D_FF)
    g = _gelu_exact(y)
    glu = y[:, :DIM_F] * g[:, DIM_F:] + y[:, DIM_F:] * g[:, :DIM_F]
    ff = _mm(glu, w2) + b2

    return _layer_norm(h1 + ff, ln2w, ln2b)


def fused_forward_kernel(x_ref, w_ref, c_ref, o_ref):
    x2 = x_ref[...]                                     # (B, 2*SEQ_LEN) f32
    B = x2.shape[0]
    BP = B * N_PATCH
    row_mask, row_clsb, row_layer0, _ = _cslab_layout(BP)

    # ---- Frame extraction + embedding linear folded into ONE matmul ----
    # tok_lanes[b, i*16+d] = token(batch b, patch i, dim d); cls lanes get only
    # the additive term (pos[7] + cls_token) since its weight columns are zero.
    tok_lanes = _mm(x2, w_ref[0:W_ROWS_EMB, :]) + c_ref[C_ROW_TOKADD:C_ROW_TOKADD + 1, :]
    # Re-pack (B, N_PATCH*D) lanes into patch-major token rows (row = i*B + b).
    tokens = jnp.concatenate(
        [tok_lanes[:, i * D_MODEL:(i + 1) * D_MODEL] for i in range(N_PATCH)], axis=0)

    mask2 = c_ref[row_mask:row_mask + BP, 0:2 * BP]     # (BP, 2*BP)

    # ---- Transformer layers (unrolled) ----
    for l in range(N_LAYERS):
        wb = W_ROW_LAYER0 + l * W_ROWS_PER_LAYER
        cb = row_layer0 + l * C_ROWS_PER_LAYER
        tokens = _transformer_layer(
            tokens, mask2,
            w_ref[wb:wb + D_MODEL, 0:4 * D_MODEL],
            w_ref[wb + D_MODEL:wb + 2 * D_MODEL, 0:D_FF],
            w_ref[wb + 2 * D_MODEL:wb + 3 * D_MODEL, 0:D_MODEL],
            c_ref[cb + 0:cb + 1, 0:D_MODEL], c_ref[cb + 1:cb + 2, 0:D_MODEL],
            c_ref[cb + 2:cb + 3, 0:D_FF],    c_ref[cb + 3:cb + 4, 0:D_MODEL],
            c_ref[cb + 4:cb + 5, 0:D_MODEL], c_ref[cb + 5:cb + 6, 0:D_MODEL])

    # ---- Classifier: last 8 token rows (contain the B cls rows, which are the
    #      last B rows in patch-major order); (8,128) lane-dense unmasked store.
    last8 = tokens[BP - OUT_ROWS:, :]
    o_ref[...] = _mm(last8, w_ref[W_ROW_CLS:W_ROW_CLS + D_MODEL, :]) + \
                 c_ref[row_clsb:row_clsb + 1, :]


# ------------------------------- wrapper ---------------------------------------
def _fea_t_forward_impl(x, wslab, cslab):
    B = x.shape[0]
    x2 = x.reshape(B, 2 * SEQ_LEN)                      # free reshape of (B,2,L)
    vmem = pl.BlockSpec(memory_space=pltpu.MemorySpace.VMEM)
    out = pl.pallas_call(
        fused_forward_kernel,
        out_shape=jax.ShapeDtypeStruct((OUT_ROWS, OUT_LANES), jnp.float32),
        in_specs=[vmem, vmem, vmem],
        out_specs=vmem,
    )(x2, wslab, cslab)
    return out[OUT_ROWS - B:, :N_CLASS]


fea_t_forward = jax.jit(_fea_t_forward_impl)


def pack_fused(params, batch):
    """One-time fold of module params into two kernel-ready slabs."""
    assert batch * N_PATCH >= OUT_ROWS and batch <= OUT_ROWS

    # ----------------- bf16 weight slab (W_SLAB_ROWS, 128) -----------------
    wslab = np.zeros((W_SLAB_ROWS, 128), np.float32)

    # Frame selection x emb_w fold: tok_lanes = x2 @ W_big.
    emb_w = np.asarray(params["emb_w"], np.float32)                 # (16,16)
    for i in range(FRAME_NUM):
        s = i * STRIDE
        wslab[s:s + PATCH_SIZE, i * D_MODEL:(i + 1) * D_MODEL] += emb_w[:PATCH_SIZE]
        wslab[SEQ_LEN + s:SEQ_LEN + s + PATCH_SIZE,
              i * D_MODEL:(i + 1) * D_MODEL] += emb_w[PATCH_SIZE:]
    # cls-patch lanes (112:128) stay zero: the cls token has no x contribution.

    for l, lp in enumerate(params["layers"]):
        base = W_ROW_LAYER0 + l * W_ROWS_PER_LAYER
        wq = np.asarray(lp["wq"], np.float32) / SCALE               # fold 1/sqrt(dqk)
        wk = np.asarray(lp["wk"], np.float32)
        wv = np.asarray(lp["wv"], np.float32)
        wo = np.asarray(lp["wo"], np.float32)
        vproj = [wv[:, h * D_V:(h + 1) * D_V] @ wo[h * D_V:(h + 1) * D_V, :]
                 for h in range(H_V)]                               # f32 fold, then bf16
        wf = np.concatenate([wq, wk] + vproj, axis=1)               # (16, 64)
        wslab[base:base + D_MODEL, :4 * D_MODEL] = wf
        wslab[base + D_MODEL:base + 2 * D_MODEL, :D_FF] = np.asarray(lp["w1"], np.float32)
        wslab[base + 2 * D_MODEL:base + 3 * D_MODEL, :D_MODEL] = np.asarray(lp["w2"], np.float32)

    wslab[W_ROW_CLS:W_ROW_CLS + D_MODEL, :N_CLASS] = np.asarray(params["cls_w"], np.float32)

    # ----------------- f32 constant slab (C_SLAB_ROWS, 128) ----------------
    bp = batch * N_PATCH
    row_mask, row_clsb, row_layer0, total_rows = _cslab_layout(bp)
    cslab = np.zeros((total_rows, 128), np.float32)

    pos     = np.asarray(params["pos_embed"], np.float32)[0]        # (8,16)
    emb_b   = np.asarray(params["emb_b"], np.float32)[0]            # (16,)
    cls_tok = np.asarray(params["cls_token"], np.float32)[0, 0]     # (16,)
    tok_add = pos.copy()
    tok_add[:FRAME_NUM] += emb_b                                    # emb bias on frame tokens
    tok_add[FRAME_NUM]  += cls_tok                                  # cls token on last token
    cslab[C_ROW_TOKADD, :N_PATCH * D_MODEL] = tok_add.reshape(-1)

    # Additive batch-separation mask (patch-major rows: batch = row % batch),
    # tiled along lanes for the two lane-packed heads.
    r = np.arange(bp)
    same = (r[:, None] % batch) == (r[None, :] % batch)
    mask = np.where(same, 0.0, -1e9).astype(np.float32)
    cslab[row_mask:row_mask + bp, :2 * bp] = np.concatenate([mask, mask], axis=1)

    cslab[row_clsb, :N_CLASS] = np.asarray(params["cls_b"], np.float32)[0]

    for l, lp in enumerate(params["layers"]):
        base = row_layer0 + l * C_ROWS_PER_LAYER
        cslab[base + 0, :D_MODEL] = np.asarray(lp["ln1_w"], np.float32)[0]
        cslab[base + 1, :D_MODEL] = np.asarray(lp["ln1_b"], np.float32)[0]
        cslab[base + 2, :D_FF]    = np.asarray(lp["b1"], np.float32)[0]
        cslab[base + 3, :D_MODEL] = np.asarray(lp["b2"], np.float32)[0]
        cslab[base + 4, :D_MODEL] = np.asarray(lp["ln2_w"], np.float32)[0]
        cslab[base + 5, :D_MODEL] = np.asarray(lp["ln2_b"], np.float32)[0]

    return jnp.asarray(wslab, jnp.bfloat16), jnp.asarray(cslab, jnp.float32)


# ------------------------------ pure-JAX reference -----------------------------
def ref_forward(x, params):
    B = x.shape[0]
    xt = jnp.transpose(x, (0, 2, 1))                    # (B, L, 2)
    feats = []
    for i in range(FRAME_NUM):
        s = i * STRIDE
        seg = xt[:, s:s + PATCH_SIZE, :]
        feats.append(jnp.concatenate([seg[:, :, 0], seg[:, :, 1]], axis=-1))
    frames = jnp.stack(feats, axis=1)                   # (B, 7, 16)

    dlY = frames @ params["emb_w"] + params["emb_b"]
    cls_tok = jnp.broadcast_to(params["cls_token"], (B, 1, D_MODEL))
    dlY = jnp.concatenate([dlY, cls_tok], axis=1) + params["pos_embed"]

    def ln(y, w, b):
        mu = jnp.mean(y, axis=-1, keepdims=True)
        var = jnp.mean((y - mu) ** 2, axis=-1, keepdims=True)
        return (y - mu) / jnp.sqrt(var + LN_EPS) * w + b

    gelu = lambda t: jax.nn.gelu(t, approximate=False)
    for lp in params["layers"]:
        q = (dlY @ lp["wq"]).reshape(B, N_PATCH, H_QK, D_QK).transpose(0, 2, 1, 3) / SCALE
        k = (dlY @ lp["wk"]).reshape(B, N_PATCH, H_QK, D_QK).transpose(0, 2, 1, 3)
        v = (dlY @ lp["wv"]).reshape(B, N_PATCH, H_V, D_V).transpose(0, 2, 1, 3)
        attn = jax.nn.softmax(q @ jnp.swapaxes(k, -2, -1), axis=-1)
        sa = (attn @ v).transpose(0, 2, 1, 3).reshape(B, N_PATCH, H_V * D_V)
        h1 = ln(dlY + sa @ lp["wo"], lp["ln1_w"][0], lp["ln1_b"][0])
        y = h1 @ lp["w1"] + lp["b1"][0]
        y1, y2 = y[..., :DIM_F], y[..., DIM_F:]
        ff = (y1 * gelu(y2) + y2 * gelu(y1)) @ lp["w2"] + lp["b2"][0]
        dlY = ln(h1 + ff, lp["ln2_w"][0], lp["ln2_b"][0])
    return dlY[:, -1] @ params["cls_w"] + params["cls_b"][0]


# ------------------------------- parameter init --------------------------------
def init_params(key):
    keys = iter(jax.random.split(key, 64))

    def lin(din, dout):
        return jax.random.normal(next(keys), (din, dout), jnp.float32) / np.sqrt(din)

    def small(shape):
        return jax.random.normal(next(keys), shape, jnp.float32) * 0.02

    params = {
        "emb_w": lin(D_MODEL, D_MODEL),
        "emb_b": small((1, D_MODEL)),
        "cls_token": small((1, 1, D_MODEL)),     # trunc_normal_(std=0.02) approximated
        "pos_embed": small((1, N_PATCH, D_MODEL)),
        "cls_w": lin(D_MODEL, N_CLASS),
        "cls_b": jnp.zeros((1, N_CLASS), jnp.float32),
        "layers": [],
    }
    for _ in range(N_LAYERS):
        params["layers"].append({
            "wq": lin(D_MODEL, H_QK * D_QK),
            "wk": lin(D_MODEL, H_QK * D_QK),
            "wv": lin(D_MODEL, H_V * D_V),
            "wo": lin(H_V * D_V, D_MODEL),
            "ln1_w": jnp.ones((1, D_MODEL), jnp.float32),
            "ln1_b": jnp.zeros((1, D_MODEL), jnp.float32),
            "w1": lin(D_MODEL, D_FF),
            "b1": small((1, D_FF)),
            "w2": lin(DIM_F, D_MODEL),
            "b2": small((1, D_MODEL)),
            "ln2_w": jnp.ones((1, D_MODEL), jnp.float32),
            "ln2_b": jnp.zeros((1, D_MODEL), jnp.float32),
        })
    # TODO(synk): nn.Dropout layers are identity at dropout=0.0 and are omitted.
    return params


# ------------------------------------ main --------------------------------------
if __name__ == "__main__":
    key = jax.random.PRNGKey(0)
    pkey, xkey = jax.random.split(key)
    params = init_params(pkey)
    wslab, cslab = pack_fused(params, BATCH)

    # Input matches the PyTorch module's expectation: (B, 2, seq_length) IQ signal.
    x = jax.random.normal(xkey, (BATCH, 2, SEQ_LEN), jnp.float32)

    out = jax.block_until_ready(fea_t_forward(x, wslab, cslab))
    assert out.shape == (BATCH, N_CLASS), out.shape
    assert bool(jnp.all(jnp.isfinite(out)))

    ref = jax.block_until_ready(ref_forward(x, params))
    np.testing.assert_allclose(np.asarray(out), np.asarray(ref), atol=5e-2, rtol=5e-2)

    print("KERNEL_OK")
</pallas_src>

<mosaic_0001>
module attributes {stable_mosaic.version = 11 : i64} {
  func.func @fused_forward_kernel(%arg0: memref<2x64xf32, #tpu.memory_space<vmem>>, %arg1: memref<176x128xbf16, #tpu.memory_space<vmem>>, %arg2: memref<48x128xf32, #tpu.memory_space<vmem>>, %arg3: memref<8x128xf32, #tpu.memory_space<vmem>>) attributes {dimension_semantics = [], scalar_prefetch = 0 : i64, scratch_operands = 0 : i64, tpu.core_type = #tpu.core_type<tc>} {
    %c0 = arith.constant 0 : index
    %c0_0 = arith.constant 0 : index
    %0 = vector.load %arg0[%c0, %c0_0] : memref<2x64xf32, #tpu.memory_space<vmem>>, vector<2x64xf32>
    %c0_1 = arith.constant 0 : index
    %c0_2 = arith.constant 0 : index
    %1 = vector.load %arg1[%c0_1, %c0_2] : memref<176x128xbf16, #tpu.memory_space<vmem>>, vector<64x128xbf16>
    %2 = arith.truncf %0 : vector<2x64xf32> to vector<2x64xbf16>
    %cst = arith.constant dense<0.000000e+00> : vector<2x128xf32>
    %3 = tpu.matmul %2, %1, %cst {dimension_numbers = #tpu.dot_dimension_numbers<[1], [0], [0], [1], [0, 0, 1, 1], [], []>} : vector<2x64xbf16>, vector<64x128xbf16>, vector<2x128xf32> -> vector<2x128xf32>
    %c0_3 = arith.constant 0 : index
    %c0_4 = arith.constant 0 : index
    %4 = vector.load %arg2[%c0_3, %c0_4] : memref<48x128xf32, #tpu.memory_space<vmem>>, vector<1x128xf32>
    %5 = vector.broadcast %4 : vector<1x128xf32> to vector<2x128xf32>
    %6 = arith.addf %3, %5 : vector<2x128xf32>
    %7 = vector.extract_strided_slice %6 {offsets = [0, 0], sizes = [2, 16], strides = [1, 1]} : vector<2x128xf32> to vector<2x16xf32>
    %8 = vector.extract_strided_slice %6 {offsets = [0, 16], sizes = [2, 16], strides = [1, 1]} : vector<2x128xf32> to vector<2x16xf32>
    %9 = vector.extract_strided_slice %6 {offsets = [0, 32], sizes = [2, 16], strides = [1, 1]} : vector<2x128xf32> to vector<2x16xf32>
    %10 = vector.extract_strided_slice %6 {offsets = [0, 48], sizes = [2, 16], strides = [1, 1]} : vector<2x128xf32> to vector<2x16xf32>
    %11 = vector.extract_strided_slice %6 {offsets = [0, 64], sizes = [2, 16], strides = [1, 1]} : vector<2x128xf32> to vector<2x16xf32>
    %12 = vector.extract_strided_slice %6 {offsets = [0, 80], sizes = [2, 16], strides = [1, 1]} : vector<2x128xf32> to vector<2x16xf32>
    %13 = vector.extract_strided_slice %6 {offsets = [0, 96], sizes = [2, 16], strides = [1, 1]} : vector<2x128xf32> to vector<2x16xf32>
    %14 = vector.extract_strided_slice %6 {offsets = [0, 112], sizes = [2, 16], strides = [1, 1]} : vector<2x128xf32> to vector<2x16xf32>
    %15 = tpu.concatenate %7, %8, %9, %10, %11, %12, %13, %14 in 0 : vector<2x16xf32>, vector<2x16xf32>, vector<2x16xf32>, vector<2x16xf32>, vector<2x16xf32>, vector<2x16xf32>, vector<2x16xf32>, vector<2x16xf32> -> vector<16x16xf32>
    %c8 = arith.constant 8 : index
    %c0_5 = arith.constant 0 : index
    %16 = vector.load %arg2[%c8, %c0_5] : memref<48x128xf32, #tpu.memory_space<vmem>>, vector<16x32xf32>
    %c64 = arith.constant 64 : index
    %c0_6 = arith.constant 0 : index
    %17 = vector.load %arg1[%c64, %c0_6] : memref<176x128xbf16, #tpu.memory_space<vmem>>, vector<16x64xbf16>
    %c80 = arith.constant 80 : index
    %c0_7 = arith.constant 0 : index
    %18 = vector.load %arg1[%c80, %c0_7] : memref<176x128xbf16, #tpu.memory_space<vmem>>, vector<16x32xbf16>
    %c96 = arith.constant 96 : index
    %c0_8 = arith.constant 0 : index
    %19 = vector.load %arg1[%c96, %c0_8] : memref<176x128xbf16, #tpu.memory_space<vmem>>, vector<16x16xbf16>
    %c32 = arith.constant 32 : index
    %c0_9 = arith.constant 0 : index
    %20 = vector.load %arg2[%c32, %c0_9] : memref<48x128xf32, #tpu.memory_space<vmem>>, vector<1x16xf32>
    %c33 = arith.constant 33 : index
    %c0_10 = arith.constant 0 : index
    %21 = vector.load %arg2[%c33, %c0_10] : memref<48x128xf32, #tpu.memory_space<vmem>>, vector<1x16xf32>
    %c34 = arith.constant 34 : index
    %c0_11 = arith.constant 0 : index
    %22 = vector.load %arg2[%c34, %c0_11] : memref<48x128xf32, #tpu.memory_space<vmem>>, vector<1x32xf32>
    %c35 = arith.constant 35 : index
    %c0_12 = arith.constant 0 : index
    %23 = vector.load %arg2[%c35, %c0_12] : memref<48x128xf32, #tpu.memory_space<vmem>>, vector<1x16xf32>
    %c36 = arith.constant 36 : index
    %c0_13 = arith.constant 0 : index
    %24 = vector.load %arg2[%c36, %c0_13] : memref<48x128xf32, #tpu.memory_space<vmem>>, vector<1x16xf32>
    %c37 = arith.constant 37 : index
    %c0_14 = arith.constant 0 : index
    %25 = vector.load %arg2[%c37, %c0_14] : memref<48x128xf32, #tpu.memory_space<vmem>>, vector<1x16xf32>
    %26 = arith.truncf %15 : vector<16x16xf32> to vector<16x16xbf16>
    %cst_15 = arith.constant dense<0.000000e+00> : vector<16x64xf32>
    %27 = tpu.matmul %26, %17, %cst_15 {dimension_numbers = #tpu.dot_dimension_numbers<[1], [0], [0], [1], [0, 0, 1, 1], [], []>} : vector<16x16xbf16>, vector<16x64xbf16>, vector<16x64xf32> -> vector<16x64xf32>
    %28 = vector.extract_strided_slice %27 {offsets = [0, 0], sizes = [16, 16], strides = [1, 1]} : vector<16x64xf32> to vector<16x16xf32>
    %29 = vector.extract_strided_slice %27 {offsets = [0, 16], sizes = [16, 16], strides = [1, 1]} : vector<16x64xf32> to vector<16x16xf32>
    %30 = vector.extract_strided_slice %27 {offsets = [0, 32], sizes = [16, 16], strides = [1, 1]} : vector<16x64xf32> to vector<16x16xf32>
    %31 = vector.extract_strided_slice %27 {offsets = [0, 48], sizes = [16, 16], strides = [1, 1]} : vector<16x64xf32> to vector<16x16xf32>
    %32 = vector.extract_strided_slice %28 {offsets = [0, 0], sizes = [16, 8], strides = [1, 1]} : vector<16x16xf32> to vector<16x8xf32>
    %33 = vector.extract_strided_slice %29 {offsets = [0, 0], sizes = [16, 8], strides = [1, 1]} : vector<16x16xf32> to vector<16x8xf32>
    %34 = arith.truncf %32 : vector<16x8xf32> to vector<16x8xbf16>
    %35 = arith.truncf %33 : vector<16x8xf32> to vector<16x8xbf16>
    %cst_16 = arith.constant dense<0.000000e+00> : vector<16x16xf32>
    %36 = tpu.matmul %34, %35, %cst_16 {dimension_numbers = #tpu.dot_dimension_numbers<[1], [1], [0], [0], [0, 0, 1, 0], [], []>} : vector<16x8xbf16>, vector<16x8xbf16>, vector<16x16xf32> -> vector<16x16xf32>
    %37 = vector.extract_strided_slice %28 {offsets = [0, 8], sizes = [16, 8], strides = [1, 1]} : vector<16x16xf32> to vector<16x8xf32>
    %38 = vector.extract_strided_slice %29 {offsets = [0, 8], sizes = [16, 8], strides = [1, 1]} : vector<16x16xf32> to vector<16x8xf32>
    %39 = arith.truncf %37 : vector<16x8xf32> to vector<16x8xbf16>
    %40 = arith.truncf %38 : vector<16x8xf32> to vector<16x8xbf16>
    %cst_17 = arith.constant dense<0.000000e+00> : vector<16x16xf32>
    %41 = tpu.matmul %39, %40, %cst_17 {dimension_numbers = #tpu.dot_dimension_numbers<[1], [1], [0], [0], [0, 0, 1, 0], [], []>} : vector<16x8xbf16>, vector<16x8xbf16>, vector<16x16xf32> -> vector<16x16xf32>
    %42 = tpu.concatenate %36, %41 in 1 : vector<16x16xf32>, vector<16x16xf32> -> vector<16x32xf32>
    %43 = arith.addf %42, %16 : vector<16x32xf32>
    %cst_18 = arith.constant dense<0xFF800000> : vector<16xf32>
    %44 = vector.multi_reduction <maximumf>, %43, %cst_18 [1] : vector<16x32xf32> to vector<16xf32>
    %45 = vector.shape_cast %44 : vector<16xf32> to vector<16x1xf32>
    %46 = vector.broadcast %45 : vector<16x1xf32> to vector<16x32xf32>
    %47 = arith.subf %43, %46 : vector<16x32xf32>
    %48 = math.exp %47 : vector<16x32xf32>
    %49 = vector.extract_strided_slice %48 {offsets = [0, 0], sizes = [16, 16], strides = [1, 1]} : vector<16x32xf32> to vector<16x16xf32>
    %50 = vector.extract_strided_slice %48 {offsets = [0, 16], sizes = [16, 16], strides = [1, 1]} : vector<16x32xf32> to vector<16x16xf32>
    %cst_19 = arith.constant dense<0.000000e+00> : vector<16xf32>
    %51 = vector.multi_reduction <add>, %49, %cst_19 [1] : vector<16x16xf32> to vector<16xf32>
    %52 = vector.shape_cast %51 : vector<16xf32> to vector<16x1xf32>
    %53 = tpu.reciprocal %52 {approx = true} : vector<16x1xf32> -> vector<16x1xf32>
    %cst_20 = arith.constant dense<0.000000e+00> : vector<16xf32>
    %54 = vector.multi_reduction <add>, %50, %cst_20 [1] : vector<16x16xf32> to vector<16xf32>
    %55 = vector.shape_cast %54 : vector<16xf32> to vector<16x1xf32>
    %56 = tpu.reciprocal %55 {approx = true} : vector<16x1xf32> -> vector<16x1xf32>
    %57 = arith.truncf %49 : vector<16x16xf32> to vector<16x16xbf16>
    %58 = arith.truncf %30 : vector<16x16xf32> to vector<16x16xbf16>
    %cst_21 = arith.constant dense<0.000000e+00> : vector<16x16xf32>
    %59 = tpu.matmul %57, %58, %cst_21 {dimension_numbers = #tpu.dot_dimension_numbers<[1], [0], [0], [1], [0, 0, 1, 1], [], []>} : vector<16x16xbf16>, vector<16x16xbf16>, vector<16x16xf32> -> vector<16x16xf32>
    %60 = vector.broadcast %53 : vector<16x1xf32> to vector<16x16xf32>
    %61 = arith.mulf %59, %60 : vector<16x16xf32>
    %62 = arith.truncf %50 : vector<16x16xf32> to vector<16x16xbf16>
    %63 = arith.truncf %31 : vector<16x16xf32> to vector<16x16xbf16>
    %cst_22 = arith.constant dense<0.000000e+00> : vector<16x16xf32>
    %64 = tpu.matmul %62, %63, %cst_22 {dimension_numbers = #tpu.dot_dimension_numbers<[1], [0], [0], [1], [0, 0, 1, 1], [], []>} : vector<16x16xbf16>, vector<16x16xbf16>, vector<16x16xf32> -> vector<16x16xf32>
    %65 = vector.broadcast %56 : vector<16x1xf32> to vector<16x16xf32>
    %66 = arith.mulf %64, %65 : vector<16x16xf32>
    %67 = arith.addf %61, %66 : vector<16x16xf32>
    %68 = arith.addf %15, %67 : vector<16x16xf32>
    %cst_23 = arith.constant dense<0.000000e+00> : vector<16xf32>
    %69 = vector.multi_reduction <add>, %68, %cst_23 [1] : vector<16x16xf32> to vector<16xf32>
    %70 = vector.shape_cast %69 : vector<16xf32> to vector<16x1xf32>
    %cst_24 = arith.constant 1.600000e+01 : f32
    %71 = vector.broadcast %cst_24 : f32 to vector<16x1xf32>
    %72 = arith.divf %70, %71 : vector<16x1xf32>
    %73 = arith.mulf %68, %68 : vector<16x16xf32>
    %cst_25 = arith.constant dense<0.000000e+00> : vector<16xf32>
    %74 = vector.multi_reduction <add>, %73, %cst_25 [1] : vector<16x16xf32> to vector<16xf32>
    %75 = vector.shape_cast %74 : vector<16xf32> to vector<16x1xf32>
    %cst_26 = arith.constant 1.600000e+01 : f32
    %76 = vector.broadcast %cst_26 : f32 to vector<16x1xf32>
    %77 = arith.divf %75, %76 : vector<16x1xf32>
    %78 = arith.mulf %72, %72 : vector<16x1xf32>
    %79 = arith.subf %77, %78 : vector<16x1xf32>
    %80 = vector.broadcast %72 : vector<16x1xf32> to vector<16x16xf32>
    %81 = arith.subf %68, %80 : vector<16x16xf32>
    %cst_27 = arith.constant 9.99999974E-6 : f32
    %82 = vector.broadcast %cst_27 : f32 to vector<16x1xf32>
    %83 = arith.addf %79, %82 : vector<16x1xf32>
    %84 = math.rsqrt %83 : vector<16x1xf32>
    %85 = vector.broadcast %84 : vector<16x1xf32> to vector<16x16xf32>
    %86 = arith.mulf %81, %85 : vector<16x16xf32>
    %87 = vector.broadcast %20 : vector<1x16xf32> to vector<16x16xf32>
    %88 = arith.mulf %86, %87 : vector<16x16xf32>
    %89 = vector.broadcast %21 : vector<1x16xf32> to vector<16x16xf32>
    %90 = arith.addf %88, %89 : vector<16x16xf32>
    %91 = arith.truncf %90 : vector<16x16xf32> to vector<16x16xbf16>
    %cst_28 = arith.constant dense<0.000000e+00> : vector<16x32xf32>
    %92 = tpu.matmul %91, %18, %cst_28 {dimension_numbers = #tpu.dot_dimension_numbers<[1], [0], [0], [1], [0, 0, 1, 1], [], []>} : vector<16x16xbf16>, vector<16x32xbf16>, vector<16x32xf32> -> vector<16x32xf32>
    %93 = vector.broadcast %22 : vector<1x32xf32> to vector<16x32xf32>
    %94 = arith.addf %92, %93 : vector<16x32xf32>
    %cst_29 = arith.constant 0.707106769 : f32
    %95 = vector.broadcast %cst_29 : f32 to vector<16x32xf32>
    %96 = arith.mulf %94, %95 : vector<16x32xf32>
    %97 = math.absf %96 : vector<16x32xf32>
    %cst_30 = arith.constant 0.327591091 : f32
    %98 = vector.broadcast %cst_30 : f32 to vector<16x32xf32>
    %99 = arith.mulf %98, %97 : vector<16x32xf32>
    %cst_31 = arith.constant 1.000000e+00 : f32
    %100 = vector.broadcast %cst_31 : f32 to vector<16x32xf32>
    %101 = arith.addf %100, %99 : vector<16x32xf32>
    %102 = tpu.reciprocal %101 {approx = true} : vector<16x32xf32> -> vector<16x32xf32>
    %cst_32 = arith.constant 1.06140542 : f32
    %103 = vector.broadcast %cst_32 : f32 to vector<16x32xf32>
    %104 = arith.mulf %103, %102 : vector<16x32xf32>
    %cst_33 = arith.constant -1.45315206 : f32
    %105 = vector.broadcast %cst_33 : f32 to vector<16x32xf32>
    %106 = arith.addf %104, %105 : vector<16x32xf32>
    %107 = arith.mulf %106, %102 : vector<16x32xf32>
    %cst_34 = arith.constant 1.42141378 : f32
    %108 = vector.broadcast %cst_34 : f32 to vector<16x32xf32>
    %109 = arith.addf %107, %108 : vector<16x32xf32>
    %110 = arith.mulf %109, %102 : vector<16x32xf32>
    %cst_35 = arith.constant -0.284496725 : f32
    %111 = vector.broadcast %cst_35 : f32 to vector<16x32xf32>
    %112 = arith.addf %110, %111 : vector<16x32xf32>
    %113 = arith.mulf %112, %102 : vector<16x32xf32>
    %cst_36 = arith.constant 0.254829586 : f32
    %114 = vector.broadcast %cst_36 : f32 to vector<16x32xf32>
    %115 = arith.addf %113, %114 : vector<16x32xf32>
    %116 = arith.mulf %115, %102 : vector<16x32xf32>
    %cst_37 = arith.constant 0.000000e+00 : f32
    %117 = vector.broadcast %cst_37 : f32 to vector<16x32xf32>
    %118 = arith.subf %117, %97 : vector<16x32xf32>
    %119 = arith.mulf %118, %97 : vector<16x32xf32>
    %120 = math.exp %119 : vector<16x32xf32>
    %121 = arith.mulf %116, %120 : vector<16x32xf32>
    %cst_38 = arith.constant 1.000000e+00 : f32
    %122 = vector.broadcast %cst_38 : f32 to vector<16x32xf32>
    %123 = arith.subf %122, %121 : vector<16x32xf32>
    %cst_39 = arith.constant 0.000000e+00 : f32
    %124 = vector.broadcast %cst_39 : f32 to vector<16x32xf32>
    %125 = arith.cmpf olt, %96, %124 : vector<16x32xf32>
    %cst_40 = arith.constant 0.000000e+00 : f32
    %126 = vector.broadcast %cst_40 : f32 to vector<16x32xf32>
    %127 = arith.subf %126, %123 : vector<16x32xf32>
    %128 = arith.select %125, %127, %123 : vector<16x32xi1>, vector<16x32xf32>
    %cst_41 = arith.constant 5.000000e-01 : f32
    %129 = vector.broadcast %cst_41 : f32 to vector<16x32xf32>
    %130 = arith.mulf %129, %94 : vector<16x32xf32>
    %cst_42 = arith.constant 1.000000e+00 : f32
    %131 = vector.broadcast %cst_42 : f32 to vector<16x32xf32>
    %132 = arith.addf %131, %128 : vector<16x32xf32>
    %133 = arith.mulf %130, %132 : vector<16x32xf32>
    %134 = vector.extract_strided_slice %94 {offsets = [0, 0], sizes = [16, 16], strides = [1, 1]} : vector<16x32xf32> to vector<16x16xf32>
    %135 = vector.extract_strided_slice %133 {offsets = [0, 16], sizes = [16, 16], strides = [1, 1]} : vector<16x32xf32> to vector<16x16xf32>
    %136 = arith.mulf %134, %135 : vector<16x16xf32>
    %137 = vector.extract_strided_slice %94 {offsets = [0, 16], sizes = [16, 16], strides = [1, 1]} : vector<16x32xf32> to vector<16x16xf32>
    %138 = vector.extract_strided_slice %133 {offsets = [0, 0], sizes = [16, 16], strides = [1, 1]} : vector<16x32xf32> to vector<16x16xf32>
    %139 = arith.mulf %137, %138 : vector<16x16xf32>
    %140 = arith.addf %136, %139 : vector<16x16xf32>
    %141 = arith.truncf %140 : vector<16x16xf32> to vector<16x16xbf16>
    %cst_43 = arith.constant dense<0.000000e+00> : vector<16x16xf32>
    %142 = tpu.matmul %141, %19, %cst_43 {dimension_numbers = #tpu.dot_dimension_numbers<[1], [0], [0], [1], [0, 0, 1, 1], [], []>} : vector<16x16xbf16>, vector<16x16xbf16>, vector<16x16xf32> -> vector<16x16xf32>
    %143 = vector.broadcast %23 : vector<1x16xf32> to vector<16x16xf32>
    %144 = arith.addf %142, %143 : vector<16x16xf32>
    %145 = arith.addf %90, %144 : vector<16x16xf32>
    %cst_44 = arith.constant dense<0.000000e+00> : vector<16xf32>
    %146 = vector.multi_reduction <add>, %145, %cst_44 [1] : vector<16x16xf32> to vector<16xf32>
    %147 = vector.shape_cast %146 : vector<16xf32> to vector<16x1xf32>
    %cst_45 = arith.constant 1.600000e+01 : f32
    %148 = vector.broadcast %cst_45 : f32 to vector<16x1xf32>
    %149 = arith.divf %147, %148 : vector<16x1xf32>
    %150 = arith.mulf %145, %145 : vector<16x16xf32>
    %cst_46 = arith.constant dense<0.000000e+00> : vector<16xf32>
    %151 = vector.multi_reduction <add>, %150, %cst_46 [1] : vector<16x16xf32> to vector<16xf32>
    %152 = vector.shape_cast %151 : vector<16xf32> to vector<16x1xf32>
    %cst_47 = arith.constant 1.600000e+01 : f32
    %153 = vector.broadcast %cst_47 : f32 to vector<16x1xf32>
    %154 = arith.divf %152, %153 : vector<16x1xf32>
    %155 = arith.mulf %149, %149 : vector<16x1xf32>
    %156 = arith.subf %154, %155 : vector<16x1xf32>
    %157 = vector.broadcast %149 : vector<16x1xf32> to vector<16x16xf32>
    %158 = arith.subf %145, %157 : vector<16x16xf32>
    %cst_48 = arith.constant 9.99999974E-6 : f32
    %159 = vector.broadcast %cst_48 : f32 to vector<16x1xf32>
    %160 = arith.addf %156, %159 : vector<16x1xf32>
    %161 = math.rsqrt %160 : vector<16x1xf32>
    %162 = vector.broadcast %161 : vector<16x1xf32> to vector<16x16xf32>
    %163 = arith.mulf %158, %162 : vector<16x16xf32>
    %164 = vector.broadcast %24 : vector<1x16xf32> to vector<16x16xf32>
    %165 = arith.mulf %163, %164 : vector<16x16xf32>
    %166 = vector.broadcast %25 : vector<1x16xf32> to vector<16x16xf32>
    %167 = arith.addf %165, %166 : vector<16x16xf32>
    %c112 = arith.constant 112 : index
    %c0_49 = arith.constant 0 : index
    %168 = vector.load %arg1[%c112, %c0_49] : memref<176x128xbf16, #tpu.memory_space<vmem>>, vector<16x64xbf16>
    %c128 = arith.constant 128 : index
    %c0_50 = arith.constant 0 : index
    %169 = vector.load %arg1[%c128, %c0_50] : memref<176x128xbf16, #tpu.memory_space<vmem>>, vector<16x32xbf16>
    %c144 = arith.constant 144 : index
    %c0_51 = arith.constant 0 : index
    %170 = vector.load %arg1[%c144, %c0_51] : memref<176x128xbf16, #tpu.memory_space<vmem>>, vector<16x16xbf16>
    %c40 = arith.constant 40 : index
    %c0_52 = arith.constant 0 : index
    %171 = vector.load %arg2[%c40, %c0_52] : memref<48x128xf32, #tpu.memory_space<vmem>>, vector<1x16xf32>
    %c41 = arith.constant 41 : index
    %c0_53 = arith.constant 0 : index
    %172 = vector.load %arg2[%c41, %c0_53] : memref<48x128xf32, #tpu.memory_space<vmem>>, vector<1x16xf32>
    %c42 = arith.constant 42 : index
    %c0_54 = arith.constant 0 : index
    %173 = vector.load %arg2[%c42, %c0_54] : memref<48x128xf32, #tpu.memory_space<vmem>>, vector<1x32xf32>
    %c43 = arith.constant 43 : index
    %c0_55 = arith.constant 0 : index
    %174 = vector.load %arg2[%c43, %c0_55] : memref<48x128xf32, #tpu.memory_space<vmem>>, vector<1x16xf32>
    %c44 = arith.constant 44 : index
    %c0_56 = arith.constant 0 : index
    %175 = vector.load %arg2[%c44, %c0_56] : memref<48x128xf32, #tpu.memory_space<vmem>>, vector<1x16xf32>
    %c45 = arith.constant 45 : index
    %c0_57 = arith.constant 0 : index
    %176 = vector.load %arg2[%c45, %c0_57] : memref<48x128xf32, #tpu.memory_space<vmem>>, vector<1x16xf32>
    %177 = arith.truncf %167 : vector<16x16xf32> to vector<16x16xbf16>
    %cst_58 = arith.constant dense<0.000000e+00> : vector<16x64xf32>
    %178 = tpu.matmul %177, %168, %cst_58 {dimension_numbers = #tpu.dot_dimension_numbers<[1], [0], [0], [1], [0, 0, 1, 1], [], []>} : vector<16x16xbf16>, vector<16x64xbf16>, vector<16x64xf32> -> vector<16x64xf32>
    %179 = vector.extract_strided_slice %178 {offsets = [0, 0], sizes = [16, 16], strides = [1, 1]} : vector<16x64xf32> to vector<16x16xf32>
    %180 = vector.extract_strided_slice %178 {offsets = [0, 16], sizes = [16, 16], strides = [1, 1]} : vector<16x64xf32> to vector<16x16xf32>
    %181 = vector.extract_strided_slice %178 {offsets = [0, 32], sizes = [16, 16], strides = [1, 1]} : vector<16x64xf32> to vector<16x16xf32>
    %182 = vector.extract_strided_slice %178 {offsets = [0, 48], sizes = [16, 16], strides = [1, 1]} : vector<16x64xf32> to vector<16x16xf32>
    %183 = vector.extract_strided_slice %179 {offsets = [0, 0], sizes = [16, 8], strides = [1, 1]} : vector<16x16xf32> to vector<16x8xf32>
    %184 = vector.extract_strided_slice %180 {offsets = [0, 0], sizes = [16, 8], strides = [1, 1]} : vector<16x16xf32> to vector<16x8xf32>
    %185 = arith.truncf %183 : vector<16x8xf32> to vector<16x8xbf16>
    %186 = arith.truncf %184 : vector<16x8xf32> to vector<16x8xbf16>
    %cst_59 = arith.constant dense<0.000000e+00> : vector<16x16xf32>
    %187 = tpu.matmul %185, %186, %cst_59 {dimension_numbers = #tpu.dot_dimension_numbers<[1], [1], [0], [0], [0, 0, 1, 0], [], []>} : vector<16x8xbf16>, vector<16x8xbf16>, vector<16x16xf32> -> vector<16x16xf32>
    %188 = vector.extract_strided_slice %179 {offsets = [0, 8], sizes = [16, 8], strides = [1, 1]} : vector<16x16xf32> to vector<16x8xf32>
    %189 = vector.extract_strided_slice %180 {offsets = [0, 8], sizes = [16, 8], strides = [1, 1]} : vector<16x16xf32> to vector<16x8xf32>
    %190 = arith.truncf %188 : vector<16x8xf32> to vector<16x8xbf16>
    %191 = arith.truncf %189 : vector<16x8xf32> to vector<16x8xbf16>
    %cst_60 = arith.constant dense<0.000000e+00> : vector<16x16xf32>
    %192 = tpu.matmul %190, %191, %cst_60 {dimension_numbers = #tpu.dot_dimension_numbers<[1], [1], [0], [0], [0, 0, 1, 0], [], []>} : vector<16x8xbf16>, vector<16x8xbf16>, vector<16x16xf32> -> vector<16x16xf32>
    %193 = tpu.concatenate %187, %192 in 1 : vector<16x16xf32>, vector<16x16xf32> -> vector<16x32xf32>
    %194 = arith.addf %193, %16 : vector<16x32xf32>
    %cst_61 = arith.constant dense<0xFF800000> : vector<16xf32>
    %195 = vector.multi_reduction <maximumf>, %194, %cst_61 [1] : vector<16x32xf32> to vector<16xf32>
    %196 = vector.shape_cast %195 : vector<16xf32> to vector<16x1xf32>
    %197 = vector.broadcast %196 : vector<16x1xf32> to vector<16x32xf32>
    %198 = arith.subf %194, %197 : vector<16x32xf32>
    %199 = math.exp %198 : vector<16x32xf32>
    %200 = vector.extract_strided_slice %199 {offsets = [0, 0], sizes = [16, 16], strides = [1, 1]} : vector<16x32xf32> to vector<16x16xf32>
    %201 = vector.extract_strided_slice %199 {offsets = [0, 16], sizes = [16, 16], strides = [1, 1]} : vector<16x32xf32> to vector<16x16xf32>
    %cst_62 = arith.constant dense<0.000000e+00> : vector<16xf32>
    %202 = vector.multi_reduction <add>, %200, %cst_62 [1] : vector<16x16xf32> to vector<16xf32>
    %203 = vector.shape_cast %202 : vector<16xf32> to vector<16x1xf32>
    %204 = tpu.reciprocal %203 {approx = true} : vector<16x1xf32> -> vector<16x1xf32>
    %cst_63 = arith.constant dense<0.000000e+00> : vector<16xf32>
    %205 = vector.multi_reduction <add>, %201, %cst_63 [1] : vector<16x16xf32> to vector<16xf32>
    %206 = vector.shape_cast %205 : vector<16xf32> to vector<16x1xf32>
    %207 = tpu.reciprocal %206 {approx = true} : vector<16x1xf32> -> vector<16x1xf32>
    %208 = arith.truncf %200 : vector<16x16xf32> to vector<16x16xbf16>
    %209 = arith.truncf %181 : vector<16x16xf32> to vector<16x16xbf16>
    %cst_64 = arith.constant dense<0.000000e+00> : vector<16x16xf32>
    %210 = tpu.matmul %208, %209, %cst_64 {dimension_numbers = #tpu.dot_dimension_numbers<[1], [0], [0], [1], [0, 0, 1, 1], [], []>} : vector<16x16xbf16>, vector<16x16xbf16>, vector<16x16xf32> -> vector<16x16xf32>
    %211 = vector.broadcast %204 : vector<16x1xf32> to vector<16x16xf32>
    %212 = arith.mulf %210, %211 : vector<16x16xf32>
    %213 = arith.truncf %201 : vector<16x16xf32> to vector<16x16xbf16>
    %214 = arith.truncf %182 : vector<16x16xf32> to vector<16x16xbf16>
    %cst_65 = arith.constant dense<0.000000e+00> : vector<16x16xf32>
    %215 = tpu.matmul %213, %214, %cst_65 {dimension_numbers = #tpu.dot_dimension_numbers<[1], [0], [0], [1], [0, 0, 1, 1], [], []>} : vector<16x16xbf16>, vector<16x16xbf16>, vector<16x16xf32> -> vector<16x16xf32>
    %216 = vector.broadcast %207 : vector<16x1xf32> to vector<16x16xf32>
    %217 = arith.mulf %215, %216 : vector<16x16xf32>
    %218 = arith.addf %212, %217 : vector<16x16xf32>
    %219 = arith.addf %167, %218 : vector<16x16xf32>
    %cst_66 = arith.constant dense<0.000000e+00> : vector<16xf32>
    %220 = vector.multi_reduction <add>, %219, %cst_66 [1] : vector<16x16xf32> to vector<16xf32>
    %221 = vector.shape_cast %220 : vector<16xf32> to vector<16x1xf32>
    %cst_67 = arith.constant 1.600000e+01 : f32
    %222 = vector.broadcast %cst_67 : f32 to vector<16x1xf32>
    %223 = arith.divf %221, %222 : vector<16x1xf32>
    %224 = arith.mulf %219, %219 : vector<16x16xf32>
    %cst_68 = arith.constant dense<0.000000e+00> : vector<16xf32>
    %225 = vector.multi_reduction <add>, %224, %cst_68 [1] : vector<16x16xf32> to vector<16xf32>
    %226 = vector.shape_cast %225 : vector<16xf32> to vector<16x1xf32>
    %cst_69 = arith.constant 1.600000e+01 : f32
    %227 = vector.broadcast %cst_69 : f32 to vector<16x1xf32>
    %228 = arith.divf %226, %227 : vector<16x1xf32>
    %229 = arith.mulf %223, %223 : vector<16x1xf32>
    %230 = arith.subf %228, %229 : vector<16x1xf32>
    %231 = vector.broadcast %223 : vector<16x1xf32> to vector<16x16xf32>
    %232 = arith.subf %219, %231 : vector<16x16xf32>
    %cst_70 = arith.constant 9.99999974E-6 : f32
    %233 = vector.broadcast %cst_70 : f32 to vector<16x1xf32>
    %234 = arith.addf %230, %233 : vector<16x1xf32>
    %235 = math.rsqrt %234 : vector<16x1xf32>
    %236 = vector.broadcast %235 : vector<16x1xf32> to vector<16x16xf32>
    %237 = arith.mulf %232, %236 : vector<16x16xf32>
    %238 = vector.broadcast %171 : vector<1x16xf32> to vector<16x16xf32>
    %239 = arith.mulf %237, %238 : vector<16x16xf32>
    %240 = vector.broadcast %172 : vector<1x16xf32> to vector<16x16xf32>
    %241 = arith.addf %239, %240 : vector<16x16xf32>
    %242 = arith.truncf %241 : vector<16x16xf32> to vector<16x16xbf16>
    %cst_71 = arith.constant dense<0.000000e+00> : vector<16x32xf32>
    %243 = tpu.matmul %242, %169, %cst_71 {dimension_numbers = #tpu.dot_dimension_numbers<[1], [0], [0], [1], [0, 0, 1, 1], [], []>} : vector<16x16xbf16>, vector<16x32xbf16>, vector<16x32xf32> -> vector<16x32xf32>
    %244 = vector.broadcast %173 : vector<1x32xf32> to vector<16x32xf32>
    %245 = arith.addf %243, %244 : vector<16x32xf32>
    %cst_72 = arith.constant 0.707106769 : f32
    %246 = vector.broadcast %cst_72 : f32 to vector<16x32xf32>
    %247 = arith.mulf %245, %246 : vector<16x32xf32>
    %248 = math.absf %247 : vector<16x32xf32>
    %cst_73 = arith.constant 0.327591091 : f32
    %249 = vector.broadcast %cst_73 : f32 to vector<16x32xf32>
    %250 = arith.mulf %249, %248 : vector<16x32xf32>
    %cst_74 = arith.constant 1.000000e+00 : f32
    %251 = vector.broadcast %cst_74 : f32 to vector<16x32xf32>
    %252 = arith.addf %251, %250 : vector<16x32xf32>
    %253 = tpu.reciprocal %252 {approx = true} : vector<16x32xf32> -> vector<16x32xf32>
    %cst_75 = arith.constant 1.06140542 : f32
    %254 = vector.broadcast %cst_75 : f32 to vector<16x32xf32>
    %255 = arith.mulf %254, %253 : vector<16x32xf32>
    %cst_76 = arith.constant -1.45315206 : f32
    %256 = vector.broadcast %cst_76 : f32 to vector<16x32xf32>
    %257 = arith.addf %255, %256 : vector<16x32xf32>
    %258 = arith.mulf %257, %253 : vector<16x32xf32>
    %cst_77 = arith.constant 1.42141378 : f32
    %259 = vector.broadcast %cst_77 : f32 to vector<16x32xf32>
    %260 = arith.addf %258, %259 : vector<16x32xf32>
    %261 = arith.mulf %260, %253 : vector<16x32xf32>
    %cst_78 = arith.constant -0.284496725 : f32
    %262 = vector.broadcast %cst_78 : f32 to vector<16x32xf32>
    %263 = arith.addf %261, %262 : vector<16x32xf32>
    %264 = arith.mulf %263, %253 : vector<16x32xf32>
    %cst_79 = arith.constant 0.254829586 : f32
    %265 = vector.broadcast %cst_79 : f32 to vector<16x32xf32>
    %266 = arith.addf %264, %265 : vector<16x32xf32>
    %267 = arith.mulf %266, %253 : vector<16x32xf32>
    %cst_80 = arith.constant 0.000000e+00 : f32
    %268 = vector.broadcast %cst_80 : f32 to vector<16x32xf32>
    %269 = arith.subf %268, %248 : vector<16x32xf32>
    %270 = arith.mulf %269, %248 : vector<16x32xf32>
    %271 = math.exp %270 : vector<16x32xf32>
    %272 = arith.mulf %267, %271 : vector<16x32xf32>
    %cst_81 = arith.constant 1.000000e+00 : f32
    %273 = vector.broadcast %cst_81 : f32 to vector<16x32xf32>
    %274 = arith.subf %273, %272 : vector<16x32xf32>
    %cst_82 = arith.constant 0.000000e+00 : f32
    %275 = vector.broadcast %cst_82 : f32 to vector<16x32xf32>
    %276 = arith.cmpf olt, %247, %275 : vector<16x32xf32>
    %cst_83 = arith.constant 0.000000e+00 : f32
    %277 = vector.broadcast %cst_83 : f32 to vector<16x32xf32>
    %278 = arith.subf %277, %274 : vector<16x32xf32>
    %279 = arith.select %276, %278, %274 : vector<16x32xi1>, vector<16x32xf32>
    %cst_84 = arith.constant 5.000000e-01 : f32
    %280 = vector.broadcast %cst_84 : f32 to vector<16x32xf32>
    %281 = arith.mulf %280, %245 : vector<16x32xf32>
    %cst_85 = arith.constant 1.000000e+00 : f32
    %282 = vector.broadcast %cst_85 : f32 to vector<16x32xf32>
    %283 = arith.addf %282, %279 : vector<16x32xf32>
    %284 = arith.mulf %281, %283 : vector<16x32xf32>
    %285 = vector.extract_strided_slice %245 {offsets = [0, 0], sizes = [16, 16], strides = [1, 1]} : vector<16x32xf32> to vector<16x16xf32>
    %286 = vector.extract_strided_slice %284 {offsets = [0, 16], sizes = [16, 16], strides = [1, 1]} : vector<16x32xf32> to vector<16x16xf32>
    %287 = arith.mulf %285, %286 : vector<16x16xf32>
    %288 = vector.extract_strided_slice %245 {offsets = [0, 16], sizes = [16, 16], strides = [1, 1]} : vector<16x32xf32> to vector<16x16xf32>
    %289 = vector.extract_strided_slice %284 {offsets = [0, 0], sizes = [16, 16], strides = [1, 1]} : vector<16x32xf32> to vector<16x16xf32>
    %290 = arith.mulf %288, %289 : vector<16x16xf32>
    %291 = arith.addf %287, %290 : vector<16x16xf32>
    %292 = arith.truncf %291 : vector<16x16xf32> to vector<16x16xbf16>
    %cst_86 = arith.constant dense<0.000000e+00> : vector<16x16xf32>
    %293 = tpu.matmul %292, %170, %cst_86 {dimension_numbers = #tpu.dot_dimension_numbers<[1], [0], [0], [1], [0, 0, 1, 1], [], []>} : vector<16x16xbf16>, vector<16x16xbf16>, vector<16x16xf32> -> vector<16x16xf32>
    %294 = vector.broadcast %174 : vector<1x16xf32> to vector<16x16xf32>
    %295 = arith.addf %293, %294 : vector<16x16xf32>
    %296 = arith.addf %241, %295 : vector<16x16xf32>
    %cst_87 = arith.constant dense<0.000000e+00> : vector<16xf32>
    %297 = vector.multi_reduction <add>, %296, %cst_87 [1] : vector<16x16xf32> to vector<16xf32>
    %298 = vector.shape_cast %297 : vector<16xf32> to vector<16x1xf32>
    %cst_88 = arith.constant 1.600000e+01 : f32
    %299 = vector.broadcast %cst_88 : f32 to vector<16x1xf32>
    %300 = arith.divf %298, %299 : vector<16x1xf32>
    %301 = arith.mulf %296, %296 : vector<16x16xf32>
    %cst_89 = arith.constant dense<0.000000e+00> : vector<16xf32>
    %302 = vector.multi_reduction <add>, %301, %cst_89 [1] : vector<16x16xf32> to vector<16xf32>
    %303 = vector.shape_cast %302 : vector<16xf32> to vector<16x1xf32>
    %cst_90 = arith.constant 1.600000e+01 : f32
    %304 = vector.broadcast %cst_90 : f32 to vector<16x1xf32>
    %305 = arith.divf %303, %304 : vector<16x1xf32>
    %306 = arith.mulf %300, %300 : vector<16x1xf32>
    %307 = arith.subf %305, %306 : vector<16x1xf32>
    %308 = vector.broadcast %300 : vector<16x1xf32> to vector<16x16xf32>
    %309 = arith.subf %296, %308 : vector<16x16xf32>
    %cst_91 = arith.constant 9.99999974E-6 : f32
    %310 = vector.broadcast %cst_91 : f32 to vector<16x1xf32>
    %311 = arith.addf %307, %310 : vector<16x1xf32>
    %312 = math.rsqrt %311 : vector<16x1xf32>
    %313 = vector.broadcast %312 : vector<16x1xf32> to vector<16x16xf32>
    %314 = arith.mulf %309, %313 : vector<16x16xf32>
    %315 = vector.broadcast %175 : vector<1x16xf32> to vector<16x16xf32>
    %316 = arith.mulf %314, %315 : vector<16x16xf32>
    %317 = vector.broadcast %176 : vector<1x16xf32> to vector<16x16xf32>
    %318 = arith.addf %316, %317 : vector<16x16xf32>
    %319 = vector.extract_strided_slice %318 {offsets = [8, 0], sizes = [8, 16], strides = [1, 1]} : vector<16x16xf32> to vector<8x16xf32>
    %c160 = arith.constant 160 : index
    %c0_92 = arith.constant 0 : index
    %320 = vector.load %arg1[%c160, %c0_92] : memref<176x128xbf16, #tpu.memory_space<vmem>>, vector<16x128xbf16>
    %321 = arith.truncf %319 : vector<8x16xf32> to vector<8x16xbf16>
    %cst_93 = arith.constant dense<0.000000e+00> : vector<8x128xf32>
    %322 = tpu.matmul %321, %320, %cst_93 {dimension_numbers = #tpu.dot_dimension_numbers<[1], [0], [0], [1], [0, 0, 1, 1], [], []>} : vector<8x16xbf16>, vector<16x128xbf16>, vector<8x128xf32> -> vector<8x128xf32>
    %c24 = arith.constant 24 : index
    %c0_94 = arith.constant 0 : index
    %323 = vector.load %arg2[%c24, %c0_94] : memref<48x128xf32, #tpu.memory_space<vmem>>, vector<1x128xf32>
    %324 = vector.broadcast %323 : vector<1x128xf32> to vector<8x128xf32>
    %325 = arith.addf %322, %324 : vector<8x128xf32>
    %c0_95 = arith.constant 0 : index
    %c0_96 = arith.constant 0 : index
    %326 = vector.load %arg3[%c0_95, %c0_96] : memref<8x128xf32, #tpu.memory_space<vmem>>, vector<8x128xf32>
    tpu.vector_store %arg3[%c0_95, %c0_96], %325 {strides = array<i32>} : memref<8x128xf32, #tpu.memory_space<vmem>>, vector<8x128xf32>,
    return
  }
}

</mosaic_0001>

<bundles_post_ra>
// kernel: _fea_t_forward_impl.1
= control target key start
LH: loop header
LB: loop body
LE: loop exit
PB: predicated region body
PF: predicated region fallthrough
CT: control target
= control target key end

     0   :  { %8 = vsyncpa [#allocation3], 0  ;;  %s1973_s0 = inlined_call_operand.vmem [shape: f32[2,64], index: 0, kind: input, shape index: {}]   ;;  %s1974_s1 = inlined_call_operand.hbm [shape: bf16[176,128], index: 1, kind: input, shape index: {}]   ;;  %s1975_s2 = inlined_call_operand.hbm [shape: f32[48,128], index: 2, kind: input, shape index: {}]   ;;  %s1976_s3 = inlined_call_operand.vmem [shape: f32[8,128], index: 3, kind: output, shape index: {}]  }
   0x1   :  { %9 = vsyncpa [#allocation5], 0  ;;  %s1708_s12 = smov [#allocation2]   ;;  %s1660_s16 = scalar_lea.hbm %s1974_s1, 1408 }
   0x2   :  { %s17_s13 = sshll.u32 %s1708_s12, 4  ;;  %p1661_p0 = scmp.ne.s32.totalorder %s1974_s1, %s1660_s16  ;;  %s18_s13 = int_to_ptr.vmem [resolvable:$true] %s17_s13 }
   0x3   :  { %p1664_p1 = scmp.lt.u32.totalorder %s1660_s16, %s1974_s1 }
   0x5   :  { %p1666_p2 = pnand %p1664_p1, %p1661_p0 }
   0x7   :  { %1669 = shalt.err (!%p1666_p2)
}
   0x8   :  { %s1670_s21 = scalar_lea.vmem %s18_s13, 1408  ;;  %p1675_p4 = scmp.lt.s32.totalorder %s18_s13, %s18_s13 }
   0x9   :  { %p1671_p3 = scmp.ne.s32.totalorder %s18_s13, %s1670_s21  ;;  %p1676_p5 = scmp.lt.s32.totalorder %s1670_s21, %s1670_s21 }
   0xb   :  { %p1677_p6 = por %p1676_p5, %p1675_p4 }
   0xd   :  { %p1678_p7 = pnand %p1677_p6, %p1671_p3 }
   0xf   :  { %1681 = shalt.err (!%p1678_p7)
}
  0x10   :  { %s1709_s22 = smov 64   ;;  %s1710_s23 = smov 4  }
  0x11   :  { %23 = dma.hbm_to_vmem [thread:$0]  %s1974_s1, 1408, %s18_s13, [#allocation3], %s1709_s22, %s1709_s22, %s1710_s23  }
  0x12   :  { %s1711_s26 = smov [#allocation4]   ;;  %s1682_s30 = scalar_lea.hbm %s1975_s2, 768 }
  0x13   :  { %s29_s27 = sshll.u32 %s1711_s26, 4  ;;  %p1683_p8 = scmp.ne.s32.totalorder %s1975_s2, %s1682_s30  ;;  %s30_s27 = int_to_ptr.vmem [resolvable:$true] %s29_s27 }
  0x14   :  { %p1686_p9 = scmp.lt.u32.totalorder %s1682_s30, %s1975_s2 }
  0x16   :  { %p1688_p10 = pnand %p1686_p9, %p1683_p8 }
  0x18   :  { %1691 = shalt.err (!%p1688_p10)
}
  0x19   :  { %s1692_s8 = scalar_lea.vmem %s30_s27, 768  ;;  %p1697_p12 = scmp.lt.s32.totalorder %s30_s27, %s30_s27 }
  0x1a   :  { %p1693_p11 = scmp.ne.s32.totalorder %s30_s27, %s1692_s8  ;;  %p1698_p13 = scmp.lt.s32.totalorder %s1692_s8, %s1692_s8 }
  0x1c   :  { %p1699_p0 = por %p1698_p13, %p1697_p12 }
  0x1e   :  { %p1700_p1 = pnand %p1699_p0, %p1693_p11 }
  0x20   :  { %1703 = shalt.err (!%p1700_p1)
}
  0x21   :  { %s1712_s1 = smov 128   ;;  %s1713_s9 = smov 8  }
  0x22   :  { %35 = dma.hbm_to_vmem [thread:$0]  %s1975_s2, 768, %s30_s27, [#allocation5], %s1712_s1, %s1712_s1, %s1713_s9  }
  0x23   :  { %1704 = dma.done.wait [#allocation3], 1408  }
  0x24   :  { %1705 = vsyncadd [#allocation3], 4294965888 }
  0x25   :  { %1706 = dma.done.wait [#allocation5], 768  }
  0x26   :  { %1707 = vsyncadd [#allocation5], 4294966528  ;;  %v1714_v0 = vmov 0.0   ;;  %vm1715_vm0 = vmmov 0   ;;  %v1595_v1 = vld [vmem:[#allocation2] sm:$0xff]   ;;  %v1596_v2 = vld [vmem:[#allocation2 + $0x8] sm:$0xff]  }
  0x27   :  { %1477 = vmatprep.subr.bf16.mxu0 %v1714_v0  ;;  %1485 = vmatprep.mubr.msk.bf16.mxu0 %vm1715_vm0, %v1714_v0  ;;  %v1597_v3 = vld [vmem:[#allocation2 + $0x10] sm:$0xff]   ;;  %v1598_v4 = vld [vmem:[#allocation2 + $0x18] sm:$0xff]   ;;  %v43_v5 = vld [vmem:[%s1973_s0] sm:$0x3]  ;;  %vm82_vm1 = vcmask 523264   ;;  %s1716_s0 = smov 48  }
  0x28   :  { %1489 = vmatprep.subr.bf16.mxu1 %v1714_v0  ;;  %1491 = vmatprep.mubr.msk.bf16.mxu1 %vm1715_vm0, %v1714_v0  ;;  %v52_v6 = vpack.c.bf16 %v43_v5, %v43_v5  ;;  %v1401_v7 = vld [vmem:[#allocation4] ss:$0 sm:$0xff]  ;;  %v1599_v9 = vld [vmem:[#allocation2 + $0x20] sm:$0xff]   ;;  %s1717_s13 = smov 112   ;;  %s1718_s14 = smov 96   ;;  %vm151_vm2 = vcmask 1041408  }
  0x29   :  { %1478 = vmatpush3.bf16.msra.mxu0 %v1595_v1  ;;  %1490 = vmatpush3.bf16.msra.mxu1 %v1599_v9  ;;  %s1719_s15 = smov 32   ;;  %s1720_s16 = smov 80   ;;  %vm153_vm3 = vcmask 1043456   ;;  %vm155_vm4 = vcmask 1045504   ;;  %vm181_vm5 = vcmask 130048   ;;  %vm230_vm6 = vcmask 64512  }
  0x2a   :  { %1479 = vmatprep.subr.bf16.mxu0 %v1714_v0  ;;  %1495 = vmatprep.subr.bf16.mxu1 %v1714_v0  ;;  %s1721_s17 = smov 16   ;;  %s1722_s18 = smov 104   ;;  %v1815_v49 = vld [vmem:[#allocation4 + $0x8] sm:$0xff]  ;;  %vm341_vm7 = vcmask 261120   ;;  %v1818_v52 = vld [vmem:[#allocation4 + $0x10] sm:$0xff] }
  0x2b   :  { %s1723_s19 = smov 120  }
  0x2d   :  { %1480 = vmatpush3.bf16.msra.mxu0 %v1596_v2 }
  0x2e   :  { %1481 = vmatprep.subr.bf16.mxu0 %v1714_v0 }
  0x31   :  { %1482 = vmatpush3.bf16.msra.mxu0 %v1597_v3 }
  0x32   :  { %1483 = vmatprep.subr.bf16.mxu0 %v1714_v0 }
  0x35   :  { %1484 = vmatpush3.bf16.msra.mxu0 %v1598_v4 }
  0x36   :  { %1507 = vmatprep.subr.bf16.mxu0 %v1714_v0 }
  0x38   :  { %1486 = vmatmul.mubr.msk.bf16.vlgmr.msra.gmra.mrb[0].mxu0 %vm82_vm1, %v52_v6 }
  0x39   :  { %1509 = vmatprep.mubr.msk.bf16.mxu0 %vm1715_vm0, %v1714_v0 }
 0x10b   :  { %v120_v8 = vpop.f32.mrb[0].mxu0 }
 0x10c   :  { %v121_v10 = vadd.f32 %v1401_v7, %v120_v8  ;;  %v1487_v11 = vpop.f32.mrb[1].mxu0 }
 0x10d   :  { %v123_v12 = vpop.f32.mrb[2].mxu0 }
 0x10e   :  { %139 = vrot.lane.b32.xlu0 %v121_v10, %s1709_s22  ;;  %v1488_v13 = vpop.f32.mrb[3].mxu0  ;;  %v127_v14 = vrot.slane %v121_v10, 6  ;;  %v131_v15 = vrot.slane %v121_v10, 4  ;;  %v135_v16 = vrot.slane %v121_v10, 2 }
 0x110   :  { %142 = vrot.lane.b32.xlu1 %v127_v14, %s1716_s0 }
 0x112   :  { %128 = vrot.lane.b32.xlu0 %v127_v14, %s1717_s13 }
 0x114   :  { %132 = vrot.lane.b32.xlu1 %v131_v15, %s1718_s14 }
 0x116   :  { %145 = vrot.lane.b32.xlu0 %v131_v15, %s1719_s15 }
 0x118   :  { %136 = vrot.lane.b32.xlu1 %v135_v16, %s1720_s16 }
 0x11a   :  { %148 = vrot.lane.b32.xlu0 %v135_v16, %s1721_s17 }
 0x180   :  { %v140_v17 = vpop.permute.xlu0 %139 }
 0x182   :  { %v143_v18 = vpop.permute.xlu1 %142 }
 0x183   :  { %v157_v24 = vsel %vm151_vm2, %v140_v17, %v143_v18 }
 0x184   :  { %v129_v19 = vpop.permute.xlu0 %128 }
 0x185   :  { %v152_v22 = vsel %vm151_vm2, %v121_v10, %v129_v19 }
 0x186   :  { %v133_v20 = vpop.permute.xlu1 %132 }
 0x187   :  { %v154_v25 = vsel %vm153_vm3, %v152_v22, %v133_v20 }
 0x188   :  { %v146_v21 = vpop.permute.xlu0 %145 }
 0x189   :  { %v158_v26 = vsel %vm153_vm3, %v157_v24, %v146_v21 }
 0x18a   :  { %v137_v23 = vpop.permute.xlu1 %136 }
 0x18b   :  { %v1791_v28 = vsel %vm155_vm4, %v154_v25, %v137_v23 }
 0x18c   :  { %v149_v27 = vpop.permute.xlu0 %148 }
 0x18d   :  { %v1793_v29 = vsel %vm155_vm4, %v158_v26, %v149_v27 }
 0x18e   :  { %v174_v30 = vpack.c.bf16 %v1793_v29, %v1791_v28 }
 0x190   :  { %1492 = vmatmul.mubr.msk.bf16.vlgmr.msra.gmra.mrb[0].mxu1 %vm181_vm5, %v174_v30 }
 0x191   :  { %1497 = vmatprep.mubr.msk.bf16.mxu1 %vm1715_vm0, %v1714_v0 }
 0x263   :  { %v219_v31 = vpop.f32.mrb[0].mxu1 }
 0x264   :  { %v1493_v32 = vpop.f32.mrb[1].mxu1 }
 0x265   :  { %v222_v33 = vpop.f32.mrb[2].mxu1 }
 0x266   :  { %v226_v34 = vpack.c.bf16 %v222_v33, %v219_v31  ;;  %v1494_v35 = vpop.f32.mrb[3].mxu1 }
 0x268   :  { %280 = vrot.lane.b32.xlu0 %v226_v34, %s1722_s18  ;;  %228 = vrot.lane.b32.xlu1 %v226_v34, %s1717_s13 }
 0x26c   :  { %278 = vrot.lane.b32.xlu1 %v226_v34, %s1723_s19 }
 0x2da   :  { %v229_v36 = vpop.permute.xlu1 %228  ;;  %v281_v38 = vpop.permute.xlu0 %280 }
 0x2db   :  { %v235_v37 = vsel %vm230_vm6, %v229_v36, 0  ;;  %v286_v39 = vsel %vm230_vm6, %v281_v38, 0 }
 0x2dc   :  { %1496 = vmatpush3.bf16.xpose.msra.mxu1 %v235_v37 }
 0x2dd   :  { %1501 = vmatprep.subr.bf16.mxu1 %v1714_v0 }
 0x2de   :  { %v279_v40 = vpop.permute.xlu1 %278 }
 0x2e3   :  { %1498 = vmatmul.mubr.msk.bf16.vlgmr.msra.gmra.mrb[4].mxu1 %vm230_vm6, %v226_v34 }
 0x2e4   :  { %1502 = vmatpush3.bf16.xpose.msra.mxu1 %v286_v39  ;;  %1503 = vmatprep.mubr.msk.bf16.mxu1 %vm1715_vm0, %v1714_v0 }
 0x2e5   :  { %1513 = vmatprep.subr.bf16.mxu1 %v1714_v0 }
 0x2eb   :  { %1504 = vmatmul.mubr.msk.bf16.vlgmr.msra.gmra.mrb[8].mxu1 %vm230_vm6, %v279_v40 }
 0x2ec   :  { %1515 = vmatprep.mubr.msk.bf16.mxu1 %vm1715_vm0, %v1714_v0 }
 0x3b6   :  { %v271_v41 = vpop.f32.mrb[4].mxu1 }
 0x3b7   :  { %v1499_v42 = vpop.f32.mrb[5].mxu1 }
 0x3b8   :  { %v274_v43 = vpop.f32.mrb[6].mxu1 }
 0x3b9   :  { %v1500_v44 = vpop.f32.mrb[7].mxu1 }
 0x3be   :  { %v322_v45 = vpop.f32.mrb[8].mxu1 }
 0x3bf   :  { %331 = vrot.lane.b32.xlu0 %v322_v45, %s1721_s17  ;;  %v1505_v46 = vpop.f32.mrb[9].mxu1 }
 0x3c0   :  { %v325_v47 = vpop.f32.mrb[10].mxu1  ;;  %v1600_v46 = vld [vmem:[#allocation2 + $0x28] sm:$0xff]  }
 0x3c1   :  { %333 = vrot.lane.b32.xlu1 %v325_v47, %s1721_s17  ;;  %v1506_v48 = vpop.f32.mrb[11].mxu1 }
 0x431   :  { %v332_v50 = vpop.permute.xlu0 %331 }
 0x432   :  { %v337_v51 = vsel %vm181_vm5, %v271_v41, %v332_v50 }
 0x433   :  { %v334_v53 = vpop.permute.xlu1 %333  ;;  %v339_v54 = vadd.f32 %v337_v51, %v1815_v49 }
 0x434   :  { %v338_v55 = vsel %vm181_vm5, %v274_v43, %v334_v53 }
 0x435   :  { %v342_v56 = vsel %vm341_vm7, %v339_v54, -inf  ;;  %v340_v57 = vadd.f32 %v338_v55, %v1818_v52 }
 0x436   :  { %343 = vmax.xlane.f32.xlu0 %v342_v56 }
 0x437   :  { %v345_v58 = vsel %vm341_vm7, %v340_v57, -inf }
 0x438   :  { %346 = vmax.xlane.f32.xlu1 %v345_v58 }
 0x449   :  { %431 = vrot.lane.b32.xlu1 %v226_v34, %s1720_s16 }
 0x44c   :  { %379 = vrot.lane.b32.xlu0 %v226_v34, %s1718_s14 }
 0x4c3   :  { %v344_v59 = vpop.xlane.xlu0 %343 }
 0x4c4   :  { %v348_v60 = vsub.f32 %v339_v54, %v344_v59 }
 0x4c5   :  { %v347_v61 = vpop.xlane.xlu1 %346 }
 0x4c6   :  { %v350_v62 = vmul.f32 1.442695, %v348_v60  ;;  %v349_v63 = vsub.f32 %v340_v57, %v347_v61 }
 0x4c7   :  { %v380_v1 = vpop.permute.xlu0 %379 }
 0x4c8   :  { %1606 = vpow2.f32 %v350_v62  ;;  %v352_v2 = vmul.f32 1.442695, %v349_v63  ;;  %1508 = vmatpush3.bf16.msra.mxu0 %v380_v1  ;;  %v1413_v63 = vld [vmem:[#allocation4 + $0x20] ss:$0 sm:$0xff] }
 0x4c9   :  { %v432_v3 = vpop.permute.xlu1 %431  ;;  %1519 = vmatprep.subr.bf16.mxu0 %v1714_v0 }
 0x4ca   :  { %1608 = vpow2.f32 %v352_v2  ;;  %1514 = vmatpush3.bf16.msra.mxu1 %v432_v3 }
 0x4cb   :  { %1525 = vmatprep.subr.bf16.mxu1 %v1714_v0 }
 0x4d2   :  { %v1607_v4 = vpop.eup %1606 }
 0x4d3   :  { %364 = vrot.lane.b32.xlu1 %v1607_v4, %s1717_s13  ;;  %v354_v7 = vsel %vm181_vm5, %v1607_v4, 0.0 }
 0x4d4   :  { %v1609_v5 = vpop.eup %1608 }
 0x4d5   :  { %v378_v6 = vpack.c.bf16 %v1609_v5, %v1607_v4  ;;  %v357_v8 = vsel %vm181_vm5, %v1609_v5, 0.0 }
 0x4d7   :  { %429 = vrot.lane.b32.xlu0 %v378_v6, %s1717_s13  ;;  %1510 = vmatmul.mubr.msk.bf16.vlgmr.msra.gmra.mrb[4].mxu0 %vm181_vm5, %v378_v6  ;;  %v1414_v6 = vld [vmem:[#allocation4 + $0x21] ss:$0 sm:$0xff] }
 0x4d8   :  { %1521 = vmatprep.mubr.msk.bf16.mxu0 %vm1715_vm0, %v1714_v0  ;;  %1520 = vmatpush3.bf16.msra.mxu0 %v1600_v46 }
 0x4d9   :  { %1531 = vmatprep.subr.bf16.mxu0 %v1714_v0 }
 0x4db   :  { %366 = vrot.lane.b32.xlu0 %v1609_v5, %s1717_s13 }
 0x4f7   :  { %355 = vadd.xlane.f32.xlu1 %v354_v7 }
 0x4fa   :  { %358 = vadd.xlane.f32.xlu0 %v357_v8 }
 0x545   :  { %v365_v9 = vpop.permute.xlu1 %364 }
 0x546   :  { %v370_v10 = vsel %vm181_vm5, %v365_v9, 0.0 }
 0x547   :  { %371 = vadd.xlane.f32.xlu0 %v370_v10 }
 0x549   :  { %v430_v11 = vpop.permute.xlu0 %429 }
 0x54a   :  { %1516 = vmatmul.mubr.msk.bf16.vlgmr.msra.gmra.mrb[12].mxu1 %vm181_vm5, %v430_v11  ;;  %v1415_v11 = vld [vmem:[#allocation4 + $0x22] ss:$0 sm:$0xff] }
 0x54b   :  { %1527 = vmatprep.mubr.msk.bf16.mxu1 %vm1715_vm0, %v1714_v0 }
 0x54d   :  { %v367_v12 = vpop.permute.xlu0 %366 }
 0x54e   :  { %v373_v13 = vsel %vm181_vm5, %v367_v12, 0.0 }
 0x54f   :  { %374 = vadd.xlane.f32.xlu1 %v373_v13 }
 0x584   :  { %v356_v19 = vpop.xlane.xlu1 %355 }
 0x585   :  { %1610 = vrcp.f32 %v356_v19 }
 0x587   :  { %v359_v18 = vpop.xlane.xlu0 %358 }
 0x58f   :  { %v1611_v22 = vpop.eup %1610 }
 0x5aa   :  { %v419_v14 = vpop.f32.mrb[4].mxu0 }
 0x5ab   :  { %v1511_v15 = vpop.f32.mrb[5].mxu0  ;;  %v426_v26 = vmul.f32 %v1611_v22, %v419_v14 }
 0x5ac   :  { %v422_v16 = vpop.f32.mrb[6].mxu0 }
 0x5ad   :  { %v1512_v17 = vpop.f32.mrb[7].mxu0 }
 0x5d4   :  { %v372_v20 = vpop.xlane.xlu0 %371 }
 0x5d5   :  { %1612 = vrcp.f32 %v372_v20 }
 0x5d6   :  { %1614 = vrcp.f32 %v359_v18 }
 0x5dc   :  { %v375_v21 = vpop.xlane.xlu1 %374 }
 0x5dd   :  { %1616 = vrcp.f32 %v375_v21 }
 0x5df   :  { %v1613_v23 = vpop.eup %1612 }
 0x5e0   :  { %v1615_v25 = vpop.eup %1614 }
 0x5e1   :  { %v427_v33 = vmul.f32 %v1615_v25, %v422_v16 }
 0x5e7   :  { %v1617_v31 = vpop.eup %1616 }
 0x61d   :  { %v471_v24 = vpop.f32.mrb[12].mxu1 }
 0x61e   :  { %v478_v27 = vmul.f32 %v1613_v23, %v471_v24  ;;  %v1517_v30 = vpop.f32.mrb[13].mxu1 }
 0x61f   :  { %v474_v32 = vpop.f32.mrb[14].mxu1 }
 0x620   :  { %v480_v34 = vadd.f32 %v478_v27, %v426_v26  ;;  %v479_v35 = vmul.f32 %v1617_v31, %v474_v32  ;;  %v1518_v36 = vpop.f32.mrb[15].mxu1 }
 0x622   :  { %v482_v37 = vadd.f32 %v480_v34, %v1791_v28  ;;  %v481_v38 = vadd.f32 %v479_v35, %v427_v33 }
 0x624   :  { %v483_v39 = vadd.f32 %v481_v38, %v1793_v29  ;;  %v484_v40 = vsel %vm181_vm5, %v482_v37, 0.0  ;;  %v493_v41 = vmul.f32 %v482_v37, %v482_v37 }
 0x625   :  { %485 = vadd.xlane.f32.xlu0 %v484_v40 }
 0x626   :  { %v487_v42 = vsel %vm181_vm5, %v483_v39, 0.0  ;;  %v494_v43 = vmul.f32 %v483_v39, %v483_v39  ;;  %v495_v44 = vsel %vm181_vm5, %v493_v41, 0.0 }
 0x627   :  { %488 = vadd.xlane.f32.xlu1 %v487_v42 }
 0x628   :  { %v498_v45 = vsel %vm181_vm5, %v494_v43, 0.0 }
 0x629   :  { %496 = vadd.xlane.f32.xlu0 %v495_v44 }
 0x62b   :  { %499 = vadd.xlane.f32.xlu1 %v498_v45 }
 0x6b2   :  { %v486_v28 = vpop.xlane.xlu0 %485 }
 0x6b3   :  { %v491_v29 = vmul.f32 0.0625, %v486_v28 }
 0x6b4   :  { %v489_v47 = vpop.xlane.xlu1 %488 }
 0x6b5   :  { %v492_v48 = vmul.f32 0.0625, %v489_v47  ;;  %v503_v51 = vmul.f32 %v491_v29, %v491_v29  ;;  %v507_v61 = vsub.f32 %v482_v37, %v491_v29 }
 0x6b6   :  { %v497_v50 = vpop.xlane.xlu0 %496 }
 0x6b7   :  { %v501_v53 = vmul.f32 0.0625, %v497_v50  ;;  %v504_v55 = vmul.f32 %v492_v48, %v492_v48  ;;  %v508_v1 = vsub.f32 %v483_v39, %v492_v48 }
 0x6b8   :  { %v500_v54 = vpop.xlane.xlu1 %499 }
 0x6b9   :  { %v505_v56 = vsub.f32 %v501_v53, %v503_v51  ;;  %v502_v57 = vmul.f32 0.0625, %v500_v54 }
 0x6bb   :  { %v509_v58 = vadd.f32 1e-05, %v505_v56  ;;  %v506_v59 = vsub.f32 %v502_v57, %v504_v55 }
 0x6bd   :  { %1618 = vrsqrt.f32 %v509_v58  ;;  %v510_v60 = vadd.f32 1e-05, %v506_v59 }
 0x6bf   :  { %1620 = vrsqrt.f32 %v510_v60 }
 0x6c7   :  { %v1619_v62 = vpop.eup %1618 }
 0x6c8   :  { %v513_v2 = vmul.f32 %v1619_v62, %v507_v61  ;;  %v1601_v61 = vld [vmem:[#allocation2 + $0x30] sm:$0xff]  }
 0x6c9   :  { %v1621_v3 = vpop.eup %1620  ;;  %1526 = vmatpush3.bf16.msra.mxu1 %v1601_v61  ;;  %v1422_v61 = vld [vmem:[#allocation4 + $0x25] ss:$0 sm:$0xff] }
 0x6ca   :  { %v514_v4 = vmul.f32 %v1621_v3, %v508_v1  ;;  %v519_v5 = vmul.f32 %v1413_v63, %v513_v2  ;;  %1537 = vmatprep.subr.bf16.mxu1 %v1714_v0 }
 0x6cc   :  { %v520_v7 = vmul.f32 %v1413_v63, %v514_v4  ;;  %v1849_v8 = vadd.f32 %v1414_v6, %v519_v5 }
 0x6ce   :  { %v1851_v9 = vadd.f32 %v1414_v6, %v520_v7 }
 0x6d0   :  { %v527_v10 = vpack.c.bf16 %v1851_v9, %v1849_v8 }
 0x6d2   :  { %1522 = vmatmul.mubr.msk.bf16.vlgmr.msra.gmra.mrb[8].mxu0 %vm181_vm5, %v527_v10 }
 0x6d3   :  { %1533 = vmatprep.mubr.msk.bf16.mxu0 %vm1715_vm0, %v1714_v0 }
 0x7a5   :  { %v575_v12 = vpop.f32.mrb[8].mxu0 }
 0x7a6   :  { %v1858_v13 = vadd.f32 %v1415_v11, %v575_v12  ;;  %v1523_v14 = vpop.f32.mrb[9].mxu0 }
 0x7a7   :  { %v578_v15 = vpop.f32.mrb[10].mxu0 }
 0x7a8   :  { %v582_v16 = vmul.f32 0.70710677, %v1858_v13  ;;  %v1861_v17 = vadd.f32 %v1415_v11, %v578_v15  ;;  %v1524_v18 = vpop.f32.mrb[11].mxu0  ;;  %v628_v63 = vmul.f32 0.5, %v1858_v13 }
 0x7aa   :  { %v584_v19 = vand.u32 2147483647, %v582_v16  ;;  %v583_v20 = vmul.f32 0.70710677, %v1861_v17  ;;  %vm622_vm8 = vcmp.lt.f32.partialorder %v582_v16, 0.0  ;;  %v629_v5 = vmul.f32 0.5, %v1861_v17 }
 0x7ac   :  { %v586_v21 = vmul.f32 0.3275911, %v584_v19  ;;  %v585_v22 = vand.u32 2147483647, %v583_v20  ;;  %v610_v26 = vsub.f32 0.0, %v584_v19  ;;  %vm623_vm9 = vcmp.lt.f32.partialorder %v583_v20, 0.0 }
 0x7ae   :  { %v588_v23 = vadd.f32 1.0, %v586_v21  ;;  %v587_v24 = vmul.f32 0.3275911, %v585_v22  ;;  %v611_v27 = vsub.f32 0.0, %v585_v22  ;;  %v612_v31 = vmul.f32 %v610_v26, %v584_v19 }
 0x7b0   :  { %1622 = vrcp.f32 %v588_v23  ;;  %v589_v25 = vadd.f32 1.0, %v587_v24  ;;  %v613_v34 = vmul.f32 %v611_v27, %v585_v22  ;;  %v614_v36 = vmul.f32 1.442695, %v612_v31 }
 0x7b2   :  { %1624 = vrcp.f32 %v589_v25  ;;  %v616_v40 = vmul.f32 1.442695, %v613_v34  ;;  %v1418_v25 = vld [vmem:[#allocation4 + $0x23] ss:$0 sm:$0xff] }
 0x7b3   :  { %1626 = vpow2.f32 %v614_v36 }
 0x7b4   :  { %1628 = vpow2.f32 %v616_v40  ;;  %v1602_v40 = vld [vmem:[#allocation2 + $0x38] sm:$0xff]  }
 0x7b5   :  { %1532 = vmatpush3.bf16.msra.mxu0 %v1602_v40 }
 0x7b6   :  { %1543 = vmatprep.subr.bf16.mxu0 %v1714_v0 }
 0x7ba   :  { %v1623_v30 = vpop.eup %1622 }
 0x7bb   :  { %v592_v32 = vmul.f32 1.0614054, %v1623_v30 }
 0x7bc   :  { %v1625_v33 = vpop.eup %1624 }
 0x7bd   :  { %v594_v35 = vadd.f32 -1.4531521, %v592_v32  ;;  %v593_v37 = vmul.f32 1.0614054, %v1625_v33  ;;  %v1627_v51 = vpop.eup %1626 }
 0x7be   :  { %v1629_v56 = vpop.eup %1628 }
 0x7bf   :  { %v596_v38 = vmul.f32 %v1623_v30, %v594_v35  ;;  %v595_v39 = vadd.f32 -1.4531521, %v593_v37 }
 0x7c1   :  { %v598_v41 = vadd.f32 1.4214138, %v596_v38  ;;  %v597_v42 = vmul.f32 %v1625_v33, %v595_v39 }
 0x7c3   :  { %v600_v43 = vmul.f32 %v1623_v30, %v598_v41  ;;  %v599_v44 = vadd.f32 1.4214138, %v597_v42 }
 0x7c5   :  { %v602_v45 = vadd.f32 -0.28449672, %v600_v43  ;;  %v601_v46 = vmul.f32 %v1625_v33, %v599_v44 }
 0x7c7   :  { %v604_v28 = vmul.f32 %v1623_v30, %v602_v45  ;;  %v603_v29 = vadd.f32 -0.28449672, %v601_v46 }
 0x7c9   :  { %v606_v47 = vadd.f32 0.2548296, %v604_v28  ;;  %v605_v48 = vmul.f32 %v1625_v33, %v603_v29 }
 0x7cb   :  { %v608_v50 = vmul.f32 %v1623_v30, %v606_v47  ;;  %v607_v53 = vadd.f32 0.2548296, %v605_v48 }
 0x7cd   :  { %v618_v54 = vmul.f32 %v1627_v51, %v608_v50  ;;  %v609_v55 = vmul.f32 %v1625_v33, %v607_v53 }
 0x7cf   :  { %v620_v57 = vsub.f32 1.0, %v618_v54  ;;  %v619_v58 = vmul.f32 %v1629_v56, %v609_v55  ;;  %v1421_v55 = vld [vmem:[#allocation4 + $0x24] ss:$0 sm:$0xff] }
 0x7d1   :  { %v624_v59 = vsub.f32 0.0, %v620_v57  ;;  %v621_v60 = vsub.f32 1.0, %v619_v58 }
 0x7d3   :  { %v626_v62 = vsel %vm622_vm8, %v624_v59, %v620_v57  ;;  %v625_v2 = vsub.f32 0.0, %v621_v60 }
 0x7d4   :  { %v630_v1 = vadd.f32 1.0, %v626_v62 }
 0x7d5   :  { %v627_v4 = vsel %vm623_vm9, %v625_v2, %v621_v60 }
 0x7d6   :  { %v632_v3 = vmul.f32 %v630_v1, %v628_v63  ;;  %v631_v6 = vadd.f32 1.0, %v627_v4 }
 0x7d8   :  { %644 = vrot.lane.b32.xlu0 %v632_v3, %s1721_s17  ;;  %v633_v7 = vmul.f32 %v631_v6, %v629_v5 }
 0x7da   :  { %646 = vrot.lane.b32.xlu1 %v633_v7, %s1721_s17 }
 0x7dc   :  { %638 = vrot.lane.b32.xlu0 %v633_v7, %s1717_s13 }
 0x7de   :  { %636 = vrot.lane.b32.xlu1 %v632_v3, %s1717_s13 }
 0x84a   :  { %v645_v10 = vpop.permute.xlu0 %644 }
 0x84b   :  { %v650_v11 = vmul.f32 %v645_v10, %v1858_v13 }
 0x84c   :  { %v647_v12 = vpop.permute.xlu1 %646 }
 0x84d   :  { %654 = vrot.lane.b32.xlu1 %v650_v11, %s1717_s13  ;;  %v651_v14 = vmul.f32 %v647_v12, %v1861_v17 }
 0x84e   :  { %v639_v16 = vpop.permute.xlu0 %638 }
 0x84f   :  { %656 = vrot.lane.b32.xlu0 %v651_v14, %s1717_s13  ;;  %v643_v19 = vmul.f32 %v639_v16, %v1861_v17 }
 0x850   :  { %v637_v15 = vpop.permute.xlu1 %636 }
 0x851   :  { %v642_v20 = vmul.f32 %v637_v15, %v1858_v13 }
 0x8bf   :  { %v655_v18 = vpop.permute.xlu1 %654 }
 0x8c0   :  { %v660_v22 = vadd.f32 %v655_v18, %v642_v20 }
 0x8c1   :  { %v657_v21 = vpop.permute.xlu0 %656 }
 0x8c2   :  { %v661_v23 = vadd.f32 %v657_v21, %v643_v19 }
 0x8c4   :  { %v662_v24 = vpack.c.bf16 %v661_v23, %v660_v22 }
 0x8c6   :  { %1528 = vmatmul.mubr.msk.bf16.vlgmr.msra.gmra.mrb[16].mxu1 %vm181_vm5, %v662_v24 }
 0x8c7   :  { %1539 = vmatprep.mubr.msk.bf16.mxu1 %vm1715_vm0, %v1714_v0 }
 0x999   :  { %v710_v26 = vpop.f32.mrb[16].mxu1 }
 0x99a   :  { %v711_v27 = vadd.f32 %v1418_v25, %v710_v26  ;;  %v1529_v30 = vpop.f32.mrb[17].mxu1 }
 0x99b   :  { %v713_v31 = vpop.f32.mrb[18].mxu1 }
 0x99c   :  { %v717_v32 = vadd.f32 %v711_v27, %v1849_v8  ;;  %v714_v33 = vadd.f32 %v1418_v25, %v713_v31  ;;  %v1530_v17 = vpop.f32.mrb[19].mxu1 }
 0x99e   :  { %v718_v13 = vadd.f32 %v714_v33, %v1851_v9  ;;  %v719_v34 = vsel %vm181_vm5, %v717_v32, 0.0  ;;  %v727_v37 = vmul.f32 %v717_v32, %v717_v32 }
 0x99f   :  { %720 = vadd.xlane.f32.xlu1 %v719_v34 }
 0x9a0   :  { %v722_v35 = vsel %vm181_vm5, %v718_v13, 0.0  ;;  %v728_v36 = vmul.f32 %v718_v13, %v718_v13  ;;  %v729_v39 = vsel %vm181_vm5, %v727_v37, 0.0 }
 0x9a1   :  { %723 = vadd.xlane.f32.xlu0 %v722_v35 }
 0x9a2   :  { %v732_v38 = vsel %vm181_vm5, %v728_v36, 0.0 }
 0x9a3   :  { %733 = vadd.xlane.f32.xlu1 %v732_v38 }
 0x9a5   :  { %730 = vadd.xlane.f32.xlu0 %v729_v39 }
 0xa2c   :  { %v721_v8 = vpop.xlane.xlu1 %720 }
 0xa2d   :  { %v725_v41 = vmul.f32 0.0625, %v721_v8 }
 0xa2e   :  { %v724_v9 = vpop.xlane.xlu0 %723 }
 0xa2f   :  { %v726_v42 = vmul.f32 0.0625, %v724_v9  ;;  %v737_v28 = vmul.f32 %v725_v41, %v725_v41  ;;  %v741_v56 = vsub.f32 %v717_v32, %v725_v41 }
 0xa30   :  { %v734_v43 = vpop.xlane.xlu1 %733 }
 0xa31   :  { %v738_v44 = vmul.f32 %v726_v42, %v726_v42  ;;  %v736_v45 = vmul.f32 0.0625, %v734_v43  ;;  %v742_v53 = vsub.f32 %v718_v13, %v726_v42 }
 0xa32   :  { %v731_v46 = vpop.xlane.xlu0 %730 }
 0xa33   :  { %v740_v29 = vsub.f32 %v736_v45, %v738_v44  ;;  %v735_v47 = vmul.f32 0.0625, %v731_v46 }
 0xa35   :  { %v744_v48 = vadd.f32 1e-05, %v740_v29  ;;  %v739_v50 = vsub.f32 %v735_v47, %v737_v28 }
 0xa37   :  { %1630 = vrsqrt.f32 %v744_v48  ;;  %v743_v51 = vadd.f32 1e-05, %v739_v50 }
 0xa39   :  { %1632 = vrsqrt.f32 %v743_v51 }
 0xa41   :  { %v1631_v54 = vpop.eup %1630 }
 0xa42   :  { %v748_v57 = vmul.f32 %v1631_v54, %v742_v53 }
 0xa43   :  { %v1633_v58 = vpop.eup %1632 }
 0xa44   :  { %v747_v59 = vmul.f32 %v1633_v58, %v741_v56  ;;  %v754_v60 = vmul.f32 %v1421_v55, %v748_v57 }
 0xa46   :  { %v753_v62 = vmul.f32 %v1421_v55, %v747_v59  ;;  %v1889_v1 = vadd.f32 %v1422_v61, %v754_v60 }
 0xa48   :  { %v1887_v63 = vadd.f32 %v1422_v61, %v753_v62 }
 0xa4a   :  { %v773_v2 = vpack.c.bf16 %v1889_v1, %v1887_v63 }
 0xa4c   :  { %1534 = vmatmul.mubr.msk.bf16.vlgmr.msra.gmra.mrb[12].mxu0 %vm181_vm5, %v773_v2 }
 0xa4d   :  { %1545 = vmatprep.mubr.msk.bf16.mxu0 %vm1715_vm0, %v1714_v0 }
 0xb1f   :  { %v817_v3 = vpop.f32.mrb[12].mxu0 }
 0xb20   :  { %v1535_v4 = vpop.f32.mrb[13].mxu0 }
 0xb21   :  { %v820_v5 = vpop.f32.mrb[14].mxu0 }
 0xb22   :  { %v824_v6 = vpack.c.bf16 %v820_v5, %v817_v3  ;;  %v1536_v7 = vpop.f32.mrb[15].mxu0 }
 0xb24   :  { %875 = vrot.lane.b32.xlu1 %v824_v6, %s1723_s19  ;;  %877 = vrot.lane.b32.xlu0 %v824_v6, %s1722_s18 }
 0xb28   :  { %826 = vrot.lane.b32.xlu1 %v824_v6, %s1717_s13 }
 0xb96   :  { %v876_v10 = vpop.permute.xlu1 %875  ;;  %v878_v11 = vpop.permute.xlu0 %877 }
 0xb97   :  { %v883_v12 = vsel %vm230_vm6, %v878_v11, 0 }
 0xb98   :  { %1544 = vmatpush3.bf16.xpose.msra.mxu0 %v883_v12 }
 0xb99   :  { %1555 = vmatprep.subr.bf16.mxu0 %v1714_v0 }
 0xb9a   :  { %v827_v14 = vpop.permute.xlu1 %826 }
 0xb9b   :  { %v832_v15 = vsel %vm230_vm6, %v827_v14, 0 }
 0xb9c   :  { %1538 = vmatpush3.bf16.xpose.msra.mxu1 %v832_v15 }
 0xb9d   :  { %1549 = vmatprep.subr.bf16.mxu1 %v1714_v0 }
 0xb9f   :  { %1546 = vmatmul.mubr.msk.bf16.vlgmr.msra.gmra.mrb[16].mxu0 %vm230_vm6, %v876_v10 }
 0xba0   :  { %1557 = vmatprep.mubr.msk.bf16.mxu0 %vm1715_vm0, %v1714_v0 }
 0xba3   :  { %1540 = vmatmul.mubr.msk.bf16.vlgmr.msra.gmra.mrb[20].mxu1 %vm230_vm6, %v824_v6 }
 0xba4   :  { %1551 = vmatprep.mubr.msk.bf16.mxu1 %vm1715_vm0, %v1714_v0 }
 0xc72   :  { %v919_v16 = vpop.f32.mrb[16].mxu0 }
 0xc73   :  { %928 = vrot.lane.b32.xlu0 %v919_v16, %s1721_s17  ;;  %v1547_v18 = vpop.f32.mrb[17].mxu0 }
 0xc74   :  { %v922_v19 = vpop.f32.mrb[18].mxu0 }
 0xc75   :  { %930 = vrot.lane.b32.xlu1 %v922_v19, %s1721_s17  ;;  %v1548_v20 = vpop.f32.mrb[19].mxu0 }
 0xc76   :  { %v868_v21 = vpop.f32.mrb[20].mxu1  ;;  %v1603_v20 = vld [vmem:[#allocation2 + $0x40] sm:$0xff]  }
 0xc77   :  { %v1541_v22 = vpop.f32.mrb[21].mxu1 }
 0xc78   :  { %v871_v23 = vpop.f32.mrb[22].mxu1 }
 0xc79   :  { %v1542_v24 = vpop.f32.mrb[23].mxu1 }
 0xce5   :  { %v929_v25 = vpop.permute.xlu0 %928 }
 0xce6   :  { %v934_v26 = vsel %vm181_vm5, %v868_v21, %v929_v25 }
 0xce7   :  { %v931_v27 = vpop.permute.xlu1 %930  ;;  %v936_v30 = vadd.f32 %v934_v26, %v1815_v49 }
 0xce8   :  { %v935_v31 = vsel %vm181_vm5, %v871_v23, %v931_v27 }
 0xce9   :  { %v938_v32 = vsel %vm341_vm7, %v936_v30, -inf  ;;  %v937_v33 = vadd.f32 %v935_v31, %v1818_v52 }
 0xcea   :  { %939 = vmax.xlane.f32.xlu0 %v938_v32 }
 0xceb   :  { %v941_v17 = vsel %vm341_vm7, %v937_v33, -inf }
 0xcec   :  { %942 = vmax.xlane.f32.xlu1 %v941_v17 }
 0xcfd   :  { %1027 = vrot.lane.b32.xlu1 %v824_v6, %s1720_s16 }
 0xd00   :  { %975 = vrot.lane.b32.xlu0 %v824_v6, %s1718_s14 }
 0xd77   :  { %v940_v13 = vpop.xlane.xlu0 %939 }
 0xd78   :  { %v944_v34 = vsub.f32 %v936_v30, %v940_v13 }
 0xd79   :  { %v943_v35 = vpop.xlane.xlu1 %942 }
 0xd7a   :  { %v946_v36 = vmul.f32 1.442695, %v944_v34  ;;  %v945_v37 = vsub.f32 %v937_v33, %v943_v35  ;;  %v1429_v35 = vld [vmem:[#allocation4 + $0x28] ss:$0 sm:$0xff] }
 0xd7b   :  { %v976_v49 = vpop.permute.xlu0 %975 }
 0xd7c   :  { %1634 = vpow2.f32 %v946_v36  ;;  %v948_v38 = vmul.f32 1.442695, %v945_v37  ;;  %1550 = vmatpush3.bf16.msra.mxu1 %v976_v49 }
 0xd7d   :  { %v1028_v39 = vpop.permute.xlu1 %1027  ;;  %1561 = vmatprep.subr.bf16.mxu1 %v1714_v0 }
 0xd7e   :  { %1636 = vpow2.f32 %v948_v38  ;;  %1556 = vmatpush3.bf16.msra.mxu0 %v1028_v39 }
 0xd7f   :  { %1567 = vmatprep.subr.bf16.mxu0 %v1714_v0 }
 0xd86   :  { %v1635_v52 = vpop.eup %1634 }
 0xd87   :  { %960 = vrot.lane.b32.xlu1 %v1635_v52, %s1717_s13  ;;  %v950_v9 = vsel %vm181_vm5, %v1635_v52, 0.0 }
 0xd88   :  { %v1637_v40 = vpop.eup %1636 }
 0xd89   :  { %v974_v8 = vpack.c.bf16 %v1637_v40, %v1635_v52  ;;  %v953_v41 = vsel %vm181_vm5, %v1637_v40, 0.0  ;;  %v1430_v52 = vld [vmem:[#allocation4 + $0x29] ss:$0 sm:$0xff] }
 0xd8b   :  { %1025 = vrot.lane.b32.xlu0 %v974_v8, %s1717_s13  ;;  %1552 = vmatmul.mubr.msk.bf16.vlgmr.msra.gmra.mrb[24].mxu1 %vm181_vm5, %v974_v8 }
 0xd8c   :  { %1563 = vmatprep.mubr.msk.bf16.mxu1 %vm1715_vm0, %v1714_v0  ;;  %1562 = vmatpush3.bf16.msra.mxu1 %v1603_v20 }
 0xd8d   :  { %1573 = vmatprep.subr.bf16.mxu1 %v1714_v0 }
 0xd8f   :  { %962 = vrot.lane.b32.xlu0 %v1637_v40, %s1717_s13 }
 0xdab   :  { %951 = vadd.xlane.f32.xlu1 %v950_v9 }
 0xdae   :  { %954 = vadd.xlane.f32.xlu0 %v953_v41 }
 0xdf9   :  { %v961_v42 = vpop.permute.xlu1 %960 }
 0xdfa   :  { %v966_v43 = vsel %vm181_vm5, %v961_v42, 0.0  ;;  %v1431_v42 = vld [vmem:[#allocation4 + $0x2a] ss:$0 sm:$0xff] }
 0xdfb   :  { %967 = vadd.xlane.f32.xlu0 %v966_v43 }
 0xdfd   :  { %v1026_v44 = vpop.permute.xlu0 %1025 }
 0xdfe   :  { %1558 = vmatmul.mubr.msk.bf16.vlgmr.msra.gmra.mrb[20].mxu0 %vm181_vm5, %v1026_v44 }
 0xdff   :  { %1569 = vmatprep.mubr.msk.bf16.mxu0 %vm1715_vm0, %v1714_v0 }
 0xe01   :  { %v963_v45 = vpop.permute.xlu0 %962 }
 0xe02   :  { %v969_v46 = vsel %vm181_vm5, %v963_v45, 0.0 }
 0xe03   :  { %970 = vadd.xlane.f32.xlu1 %v969_v46 }
 0xe38   :  { %v952_v51 = vpop.xlane.xlu1 %951 }
 0xe39   :  { %1638 = vrcp.f32 %v952_v51 }
 0xe3b   :  { %v955_v50 = vpop.xlane.xlu0 %954 }
 0xe43   :  { %v1639_v55 = vpop.eup %1638 }
 0xe5e   :  { %v1015_v28 = vpop.f32.mrb[24].mxu1 }
 0xe5f   :  { %v1553_v29 = vpop.f32.mrb[25].mxu1  ;;  %v1022_v59 = vmul.f32 %v1639_v55, %v1015_v28 }
 0xe60   :  { %v1018_v47 = vpop.f32.mrb[26].mxu1 }
 0xe61   :  { %v1554_v48 = vpop.f32.mrb[27].mxu1 }
 0xe88   :  { %v968_v53 = vpop.xlane.xlu0 %967 }
 0xe89   :  { %1640 = vrcp.f32 %v968_v53 }
 0xe8a   :  { %1642 = vrcp.f32 %v955_v50 }
 0xe90   :  { %v971_v54 = vpop.xlane.xlu1 %970 }
 0xe91   :  { %1644 = vrcp.f32 %v971_v54 }
 0xe93   :  { %v1641_v56 = vpop.eup %1640 }
 0xe94   :  { %v1643_v58 = vpop.eup %1642 }
 0xe95   :  { %v1023_v3 = vmul.f32 %v1643_v58, %v1018_v47 }
 0xe9b   :  { %v1645_v62 = vpop.eup %1644 }
 0xed1   :  { %v1067_v57 = vpop.f32.mrb[20].mxu0 }
 0xed2   :  { %v1074_v60 = vmul.f32 %v1641_v56, %v1067_v57  ;;  %v1559_v61 = vpop.f32.mrb[21].mxu0 }
 0xed3   :  { %v1070_v2 = vpop.f32.mrb[22].mxu0 }
 0xed4   :  { %v1076_v4 = vadd.f32 %v1074_v60, %v1022_v59  ;;  %v1075_v5 = vmul.f32 %v1645_v62, %v1070_v2  ;;  %v1560_v6 = vpop.f32.mrb[23].mxu0 }
 0xed6   :  { %v1078_v7 = vadd.f32 %v1076_v4, %v1887_v63  ;;  %v1077_v10 = vadd.f32 %v1075_v5, %v1023_v3 }
 0xed8   :  { %v1079_v11 = vadd.f32 %v1077_v10, %v1889_v1  ;;  %v1080_v12 = vsel %vm181_vm5, %v1078_v7, 0.0  ;;  %v1088_v14 = vmul.f32 %v1078_v7, %v1078_v7 }
 0xed9   :  { %1081 = vadd.xlane.f32.xlu0 %v1080_v12 }
 0xeda   :  { %v1083_v15 = vsel %vm181_vm5, %v1079_v11, 0.0  ;;  %v1089_v16 = vmul.f32 %v1079_v11, %v1079_v11  ;;  %v1090_v18 = vsel %vm181_vm5, %v1088_v14, 0.0 }
 0xedb   :  { %1084 = vadd.xlane.f32.xlu1 %v1083_v15 }
 0xedc   :  { %v1093_v19 = vsel %vm181_vm5, %v1089_v16, 0.0 }
 0xedd   :  { %1091 = vadd.xlane.f32.xlu0 %v1090_v18 }
 0xedf   :  { %1094 = vadd.xlane.f32.xlu1 %v1093_v19 }
 0xf66   :  { %v1082_v63 = vpop.xlane.xlu0 %1081 }
 0xf67   :  { %v1086_v1 = vmul.f32 0.0625, %v1082_v63 }
 0xf68   :  { %v1085_v21 = vpop.xlane.xlu1 %1084 }
 0xf69   :  { %v1087_v22 = vmul.f32 0.0625, %v1085_v21  ;;  %v1098_v24 = vmul.f32 %v1086_v1, %v1086_v1  ;;  %v1102_v13 = vsub.f32 %v1078_v7, %v1086_v1 }
 0xf6a   :  { %v1092_v23 = vpop.xlane.xlu0 %1091 }
 0xf6b   :  { %v1096_v25 = vmul.f32 0.0625, %v1092_v23  ;;  %v1099_v27 = vmul.f32 %v1087_v22, %v1087_v22  ;;  %v1103_v36 = vsub.f32 %v1079_v11, %v1087_v22 }
 0xf6c   :  { %v1095_v26 = vpop.xlane.xlu1 %1094 }
 0xf6d   :  { %v1100_v30 = vsub.f32 %v1096_v25, %v1098_v24  ;;  %v1097_v31 = vmul.f32 0.0625, %v1095_v26 }
 0xf6f   :  { %v1104_v32 = vadd.f32 1e-05, %v1100_v30  ;;  %v1101_v33 = vsub.f32 %v1097_v31, %v1099_v27 }
 0xf71   :  { %1646 = vrsqrt.f32 %v1104_v32  ;;  %v1105_v17 = vadd.f32 1e-05, %v1101_v33  ;;  %v1604_v32 = vld [vmem:[#allocation2 + $0x48] sm:$0xff]  }
 0xf72   :  { %1568 = vmatpush3.bf16.msra.mxu0 %v1604_v32 }
 0xf73   :  { %1648 = vrsqrt.f32 %v1105_v17 }
 0xf7b   :  { %v1647_v34 = vpop.eup %1646 }
 0xf7c   :  { %v1108_v37 = vmul.f32 %v1647_v34, %v1102_v13 }
 0xf7d   :  { %v1649_v49 = vpop.eup %1648 }
 0xf7e   :  { %v1109_v38 = vmul.f32 %v1649_v49, %v1103_v36  ;;  %v1114_v39 = vmul.f32 %v1429_v35, %v1108_v37 }
 0xf80   :  { %v1115_v40 = vmul.f32 %v1429_v35, %v1109_v38  ;;  %v1120_v8 = vadd.f32 %v1430_v52, %v1114_v39 }
 0xf82   :  { %v1941_v9 = vadd.f32 %v1430_v52, %v1115_v40 }
 0xf84   :  { %v1122_v41 = vpack.c.bf16 %v1941_v9, %v1120_v8 }
 0xf86   :  { %1564 = vmatmul.mubr.msk.bf16.vlgmr.msra.gmra.mrb[28].mxu1 %vm181_vm5, %v1122_v41 }
 0xf87   :  { %1575 = vmatprep.mubr.msk.bf16.mxu1 %vm1715_vm0, %v1714_v0 }
0x1059   :  { %v1170_v43 = vpop.f32.mrb[28].mxu1 }
0x105a   :  { %v1947_v44 = vadd.f32 %v1431_v42, %v1170_v43  ;;  %v1565_v45 = vpop.f32.mrb[29].mxu1 }
0x105b   :  { %v1173_v46 = vpop.f32.mrb[30].mxu1 }
0x105c   :  { %v1177_v28 = vmul.f32 0.70710677, %v1947_v44  ;;  %v1950_v29 = vadd.f32 %v1431_v42, %v1173_v46  ;;  %v1566_v47 = vpop.f32.mrb[31].mxu1  ;;  %v1223_v17 = vmul.f32 0.5, %v1947_v44 }
0x105e   :  { %v1179_v48 = vand.u32 2147483647, %v1177_v28  ;;  %v1178_v50 = vmul.f32 0.70710677, %v1950_v29  ;;  %vm1217_vm10 = vcmp.lt.f32.partialorder %v1177_v28, 0.0  ;;  %v1224_v37 = vmul.f32 0.5, %v1950_v29 }
0x1060   :  { %v1181_v51 = vmul.f32 0.3275911, %v1179_v48  ;;  %v1180_v53 = vand.u32 2147483647, %v1178_v50  ;;  %v1205_v56 = vsub.f32 0.0, %v1179_v48  ;;  %vm1218_vm11 = vcmp.lt.f32.partialorder %v1178_v50, 0.0 }
0x1062   :  { %v1183_v54 = vadd.f32 1.0, %v1181_v51  ;;  %v1182_v55 = vmul.f32 0.3275911, %v1180_v53  ;;  %v1206_v57 = vsub.f32 0.0, %v1180_v53  ;;  %v1207_v59 = vmul.f32 %v1205_v56, %v1179_v48 }
0x1064   :  { %1650 = vrcp.f32 %v1183_v54  ;;  %v1184_v0 = vadd.f32 1.0, %v1182_v55  ;;  %v1208_v62 = vmul.f32 %v1206_v57, %v1180_v53  ;;  %v1209_v3 = vmul.f32 1.442695, %v1207_v59  ;;  %v1434_v53 = vld [vmem:[#allocation4 + $0x2b] ss:$0 sm:$0xff] }
0x1066   :  { %1652 = vrcp.f32 %v1184_v0  ;;  %v1211_v7 = vmul.f32 1.442695, %v1208_v62 }
0x1067   :  { %1654 = vpow2.f32 %v1209_v3 }
0x1068   :  { %1656 = vpow2.f32 %v1211_v7 }
0x106e   :  { %v1651_v58 = vpop.eup %1650 }
0x106f   :  { %v1187_v60 = vmul.f32 1.0614054, %v1651_v58 }
0x1070   :  { %v1653_v61 = vpop.eup %1652 }
0x1071   :  { %v1189_v2 = vadd.f32 -1.4531521, %v1187_v60  ;;  %v1188_v4 = vmul.f32 1.0614054, %v1653_v61  ;;  %v1655_v21 = vpop.eup %1654 }
0x1072   :  { %v1657_v25 = vpop.eup %1656 }
0x1073   :  { %v1191_v5 = vmul.f32 %v1651_v58, %v1189_v2  ;;  %v1190_v6 = vadd.f32 -1.4531521, %v1188_v4 }
0x1075   :  { %v1193_v10 = vadd.f32 1.4214138, %v1191_v5  ;;  %v1192_v11 = vmul.f32 %v1653_v61, %v1190_v6 }
0x1077   :  { %v1195_v12 = vmul.f32 %v1651_v58, %v1193_v10  ;;  %v1194_v14 = vadd.f32 1.4214138, %v1192_v11  ;;  %v1438_v11 = vld [vmem:[#allocation4 + $0x2d] ss:$0 sm:$0xff] }
0x1079   :  { %v1197_v15 = vadd.f32 -0.28449672, %v1195_v12  ;;  %v1196_v16 = vmul.f32 %v1653_v61, %v1194_v14 }
0x107b   :  { %v1199_v18 = vmul.f32 %v1651_v58, %v1197_v15  ;;  %v1198_v19 = vadd.f32 -0.28449672, %v1196_v16  ;;  %v1439_v16 = vld [vmem:[#allocation4 + $0x18] ss:$0 sm:$0xff] }
0x107d   :  { %v1201_v20 = vadd.f32 0.2548296, %v1199_v18  ;;  %v1200_v63 = vmul.f32 %v1653_v61, %v1198_v19 }
0x107f   :  { %v1203_v1 = vmul.f32 %v1651_v58, %v1201_v20  ;;  %v1202_v22 = vadd.f32 0.2548296, %v1200_v63 }
0x1081   :  { %v1213_v23 = vmul.f32 %v1655_v21, %v1203_v1  ;;  %v1204_v24 = vmul.f32 %v1653_v61, %v1202_v22 }
0x1083   :  { %v1215_v26 = vsub.f32 1.0, %v1213_v23  ;;  %v1214_v27 = vmul.f32 %v1657_v25, %v1204_v24 }
0x1085   :  { %v1219_v30 = vsub.f32 0.0, %v1215_v26  ;;  %v1216_v31 = vsub.f32 1.0, %v1214_v27 }
0x1087   :  { %v1221_v33 = vsel %vm1217_vm10, %v1219_v30, %v1215_v26  ;;  %v1220_v34 = vsub.f32 0.0, %v1216_v31 }
0x1088   :  { %v1225_v13 = vadd.f32 1.0, %v1221_v33 }
0x1089   :  { %v1222_v36 = vsel %vm1218_vm11, %v1220_v34, %v1216_v31 }
0x108a   :  { %v1227_v35 = vmul.f32 %v1225_v13, %v1223_v17  ;;  %v1226_v49 = vadd.f32 1.0, %v1222_v36 }
0x108c   :  { %1239 = vrot.lane.b32.xlu0 %v1227_v35, %s1721_s17  ;;  %v1228_v38 = vmul.f32 %v1226_v49, %v1224_v37 }
0x108e   :  { %1241 = vrot.lane.b32.xlu1 %v1228_v38, %s1721_s17 }
0x1090   :  { %1233 = vrot.lane.b32.xlu0 %v1228_v38, %s1717_s13 }
0x1092   :  { %1231 = vrot.lane.b32.xlu1 %v1227_v35, %s1717_s13 }
0x10fe   :  { %v1240_v39 = vpop.permute.xlu0 %1239 }
0x10ff   :  { %v1245_v52 = vmul.f32 %v1240_v39, %v1947_v44 }
0x1100   :  { %v1242_v40 = vpop.permute.xlu1 %1241 }
0x1101   :  { %1249 = vrot.lane.b32.xlu1 %v1245_v52, %s1717_s13  ;;  %v1246_v8 = vmul.f32 %v1242_v40, %v1950_v29 }
0x1102   :  { %v1234_v42 = vpop.permute.xlu0 %1233 }
0x1103   :  { %1251 = vrot.lane.b32.xlu0 %v1246_v8, %s1717_s13  ;;  %v1238_v45 = vmul.f32 %v1234_v42, %v1950_v29  ;;  %v1605_v29 = vld [vmem:[#allocation2 + $0x50] sm:$0xff]  }
0x1104   :  { %v1232_v41 = vpop.permute.xlu1 %1231  ;;  %1574 = vmatpush3.bf16.msra.mxu1 %v1605_v29 }
0x1105   :  { %v1237_v46 = vmul.f32 %v1232_v41, %v1947_v44 }
0x1173   :  { %v1250_v43 = vpop.permute.xlu1 %1249 }
0x1174   :  { %v1255_v47 = vadd.f32 %v1250_v43, %v1237_v46 }
0x1175   :  { %v1252_v28 = vpop.permute.xlu0 %1251 }
0x1176   :  { %v1256_v48 = vadd.f32 %v1252_v28, %v1238_v45 }
0x1178   :  { %v1257_v50 = vpack.c.bf16 %v1256_v48, %v1255_v47 }
0x117a   :  { %1570 = vmatmul.mubr.msk.bf16.vlgmr.msra.gmra.mrb[24].mxu0 %vm181_vm5, %v1257_v50 }
0x124d   :  { %v1305_v51 = vpop.f32.mrb[24].mxu0 }
0x124e   :  { %v1571_v54 = vpop.f32.mrb[25].mxu0 }
0x124f   :  { %v1307_v55 = vpop.f32.mrb[26].mxu0 }
0x1250   :  { %v1308_v0 = vadd.f32 %v1434_v53, %v1307_v55  ;;  %v1572_v56 = vpop.f32.mrb[27].mxu0 }
0x1252   :  { %v1311_v57 = vadd.f32 %v1308_v0, %v1941_v9  ;;  %v1437_v9 = vld [vmem:[#allocation4 + $0x2c] ss:$0 sm:$0xff] }
0x1254   :  { %v1312_v58 = vsel %vm181_vm5, %v1311_v57, 0.0  ;;  %v1316_v59 = vmul.f32 %v1311_v57, %v1311_v57 }
0x1255   :  { %1313 = vadd.xlane.f32.xlu1 %v1312_v58 }
0x1256   :  { %v1317_v44 = vsel %vm181_vm5, %v1316_v59, 0.0 }
0x1257   :  { %1318 = vadd.xlane.f32.xlu0 %v1317_v44 }
0x12e2   :  { %v1314_v60 = vpop.xlane.xlu1 %1313 }
0x12e3   :  { %v1315_v61 = vmul.f32 0.0625, %v1314_v60 }
0x12e4   :  { %v1319_v62 = vpop.xlane.xlu0 %1318 }
0x12e5   :  { %v1321_v2 = vmul.f32 %v1315_v61, %v1315_v61  ;;  %v1320_v3 = vmul.f32 0.0625, %v1319_v62  ;;  %v1323_v6 = vsub.f32 %v1311_v57, %v1315_v61 }
0x12e7   :  { %v1322_v4 = vsub.f32 %v1320_v3, %v1321_v2 }
0x12e9   :  { %v1324_v5 = vadd.f32 1e-05, %v1322_v4 }
0x12eb   :  { %1658 = vrsqrt.f32 %v1324_v5 }
0x12f5   :  { %v1659_v7 = vpop.eup %1658 }
0x12f6   :  { %v1326_v10 = vmul.f32 %v1659_v7, %v1323_v6 }
0x12f8   :  { %v1331_v12 = vmul.f32 %v1437_v9, %v1326_v10 }
0x12fa   :  { %v1336_v14 = vadd.f32 %v1438_v11, %v1331_v12 }
0x12fc   :  { %v1339_v15 = vpack.c.bf16 %v1336_v14, %v1336_v14 }
0x12fe   :  { %1576 = vmatmul.mubr.msk.bf16.vlgmr.msra.gmra.mrb[32].mxu1 %vm181_vm5, %v1339_v15 }
0x13d1   :  { %v1388_v18 = vpop.f32.mrb[32].mxu1 }
0x13d2   :  { %v1389_v19 = vadd.f32 %v1439_v16, %v1388_v18  ;;  %v1577_v20 = vpop.f32.mrb[33].mxu1 }
0x13d3   :  { %v1391_v63 = vpop.f32.mrb[34].mxu1 }
0x13d4   :  { %1394 = vst [vmem:[%s1976_s3] sm:$0xff] %v1389_v19  ;;  %v1578_v1 = vpop.f32.mrb[35].mxu1 }
0x13d5   :  { %1399 = vsyncpa [#allocation3], 1 }
0x13d6   :  { %1400 = vsyncpa [#allocation5], 1 }

</bundles_post_ra>
